<compile_context>
chip_gen: v7x
topology: tpu7x:2x2x1
jax: 0.10.0
libtpu: 0.0.40
codegen_flags: <defaults>
</compile_context>

<pallas_src>
import jax
import jax.numpy as jnp
from jax import lax
from jax.experimental import pallas as pl
from jax.experimental.pallas import tpu as pltpu  # noqa: F401  (TPU backend)


# ----------------------------- Model dimensions ------------------------------
EMB_DIM = 32
VOCAB = 64
SEQ = 8
IMG_HW = 16
C_IN = 1          # ImgEncoder(1) -> 1 input channel
C_OUT = 8
KSIZE = 3
STRIDE = 2
PAD = 1
H_OUT = (IMG_HW + 2 * PAD - KSIZE) // STRIDE + 1   # 8
HW = H_OUT * H_OUT                                 # 64 spatial positions
KK = C_IN * KSIZE * KSIZE                          # 9 taps per output pixel
FLAT = C_OUT * HW                                  # 512 (PyTorch .flatten(1))
TEXT_D = 32
BATCH = 2


# ------------------------------ Fused kernel ---------------------------------

def _clip_fused_kernel(ids_ref, patches_ref,
                       conv_w_ref, conv_b_ref, img_w_ref, img_b_ref,
                       tok_ref, txt_w_ref, txt_b_ref,
                       o_ref):
    """Whole CLIP forward on whole-array VMEM blocks (single grid step)."""
    # ------------------------------ image encoder ----------------------------
    patches = patches_ref[...]                                    # (B, HW, KK) f32
    bsz = patches.shape[0]
    img_emb = jnp.zeros((bsz, EMB_DIM), jnp.float32)
    for c in range(C_OUT):                                        # static unroll (8)
        # Conv2d(1->8, 3x3, stride 2, pad 1), output channel c, as VPU MACs.
        w_c = conv_w_ref[c]                                       # (1, KK) f32
        conv_c = jnp.sum(patches * w_c, axis=2) + conv_b_ref[c]   # (B, HW) f32
        h_c = jnp.maximum(conv_c, 0.0)                            # ReLU, f32 on VPU
        # Linear(FLAT, EMB) with the NCHW flatten folded into the weight:
        # img_fc_w[c*HW + p, :] == img_w_ref[c, p, :].
        img_emb = img_emb + jnp.dot(h_c.astype(jnp.bfloat16), img_w_ref[c],
                                    preferred_element_type=jnp.float32)
    img_emb = img_emb + img_b_ref[...]                            # (B, EMB) f32

    # ------------------------------ text encoder -----------------------------
    ids = ids_ref[...]                                            # (B, SEQ) int32
    vocab_iota = lax.broadcasted_iota(jnp.int32, (bsz, VOCAB), 1)
    counts = jnp.zeros((bsz, VOCAB), jnp.float32)
    for s in range(SEQ):                                          # static unroll (8)
        counts = counts + (vocab_iota == ids[:, s:s + 1]).astype(jnp.float32)
    # Embedding gather + mean-pool == (token-count matrix / SEQ) @ table; the
    # 1/SEQ factor is pre-folded into txt_w, so two MXU matmuls remain.
    pooled = jnp.dot(counts.astype(jnp.bfloat16), tok_ref[...],
                     preferred_element_type=jnp.float32)          # (B, TEXT_D)
    txt_emb = jnp.dot(pooled.astype(jnp.bfloat16), txt_w_ref[...],
                      preferred_element_type=jnp.float32) + txt_b_ref[...]

    # ------------------------------- similarity ------------------------------
    # img_emb @ txt_emb.T without an explicit transpose: contract last dims.
    o_ref[...] = lax.dot_general(
        img_emb.astype(jnp.bfloat16), txt_emb.astype(jnp.bfloat16),
        dimension_numbers=(((1,), (1,)), ((), ())),
        preferred_element_type=jnp.float32)


# ------------------------------ Param handling --------------------------------

def init_params(key):
    """Parameters in the original (PyTorch-layout) convention."""
    ks = jax.random.split(key, 4)
    scale = 0.02
    return {
        # image encoder: Conv2d(1, 8, 3, stride=2, padding=1) + ReLU, flatten,
        # Linear(512, EMB_DIM)
        "conv_w": scale * jax.random.normal(ks[0], (C_OUT, C_IN, KSIZE, KSIZE),
                                            jnp.float32),
        "conv_b": jnp.zeros((C_OUT,), jnp.float32),
        "img_fc_w": scale * jax.random.normal(ks[1], (FLAT, EMB_DIM), jnp.float32),
        "img_fc_b": jnp.zeros((EMB_DIM,), jnp.float32),
        # text encoder: Embedding(VOCAB, TEXT_D), mean over seq, Linear(TEXT_D, EMB_DIM)
        "tok_emb": scale * jax.random.normal(ks[2], (VOCAB, TEXT_D), jnp.float32),
        "txt_fc_w": scale * jax.random.normal(ks[3], (TEXT_D, EMB_DIM), jnp.float32),
        "txt_fc_b": jnp.zeros((EMB_DIM,), jnp.float32),
    }


def prepare_params(p):
    """One-time weight folding / layout prep (pure plumbing, same math):
       - fold PyTorch NCHW flatten order into a per-channel FC weight stack
       - fold the 1/SEQ mean-pool scale into the text FC weight
       - cast MXU operands to bf16 (accumulation stays f32 in-kernel)
    """
    return {
        "conv_w": p["conv_w"].reshape(C_OUT, 1, KK).astype(jnp.float32),
        "conv_b": p["conv_b"].reshape(C_OUT, 1, 1).astype(jnp.float32),
        "img_fc_w": p["img_fc_w"].reshape(C_OUT, HW, EMB_DIM).astype(jnp.bfloat16),
        "img_fc_b": p["img_fc_b"].reshape(1, EMB_DIM).astype(jnp.float32),
        "tok_emb": p["tok_emb"].astype(jnp.bfloat16),
        "txt_fc_w": (p["txt_fc_w"] / float(SEQ)).astype(jnp.bfloat16),
        "txt_fc_b": p["txt_fc_b"].reshape(1, EMB_DIM).astype(jnp.float32),
    }


# --------------------------------- Forward ------------------------------------

@jax.jit
def clip_forward(prepped, img_x, text_x):
    """img_x: [B, 1, H, W] f32 (NCHW), text_x: [B, SEQ] int32 -> logits [B, B]."""
    b = img_x.shape[0]
    # im2col is one-time wrapper layout glue; the conv math, both encoders and
    # the similarity all run inside ONE Pallas kernel.
    patches = lax.conv_general_dilated_patches(
        img_x.astype(jnp.float32),
        filter_shape=(KSIZE, KSIZE),
        window_strides=(STRIDE, STRIDE),
        padding=((PAD, PAD), (PAD, PAD)),
        dimension_numbers=("NCHW", "OIHW", "NCHW"))               # [B, KK, H, W]
    patches = patches.reshape(b, KK, HW).transpose(0, 2, 1)       # [B, HW, KK]

    return pl.pallas_call(
        _clip_fused_kernel,
        out_shape=jax.ShapeDtypeStruct((b, b), jnp.float32),
    )(text_x.astype(jnp.int32), patches,
      prepped["conv_w"], prepped["conv_b"],
      prepped["img_fc_w"], prepped["img_fc_b"],
      prepped["tok_emb"], prepped["txt_fc_w"], prepped["txt_fc_b"])


# ----------------------------------- Main --------------------------------------

if __name__ == "__main__":
    key = jax.random.PRNGKey(0)
    k_params, k_img, k_txt = jax.random.split(key, 3)

    params = init_params(k_params)
    prepped = prepare_params(params)

    img_x = jax.random.normal(k_img, (BATCH, C_IN, IMG_HW, IMG_HW), jnp.float32)
    text_x = jax.random.randint(k_txt, (BATCH, SEQ), 0, VOCAB, dtype=jnp.int32)

    logits = clip_forward(prepped, img_x, text_x)
    jax.block_until_ready(logits)
    assert logits.shape == (BATCH, BATCH)
    print("KERNEL_OK")
</pallas_src>

<mosaic_0001>
module attributes {stable_mosaic.version = 11 : i64} {
  func.func @_clip_fused_kernel(%arg0: memref<2x8xi32, #tpu.memory_space<vmem>>, %arg1: memref<2x64x9xf32, #tpu.memory_space<vmem>>, %arg2: memref<8x1x9xf32, #tpu.memory_space<vmem>>, %arg3: memref<8x1x1xf32, #tpu.memory_space<vmem>>, %arg4: memref<8x64x32xbf16, #tpu.memory_space<vmem>>, %arg5: memref<1x32xf32, #tpu.memory_space<vmem>>, %arg6: memref<64x32xbf16, #tpu.memory_space<vmem>>, %arg7: memref<32x32xbf16, #tpu.memory_space<vmem>>, %arg8: memref<1x32xf32, #tpu.memory_space<vmem>>, %arg9: memref<2x2xf32, #tpu.memory_space<vmem>>) attributes {dimension_semantics = [], scalar_prefetch = 0 : i64, scratch_operands = 0 : i64, tpu.core_type = #tpu.core_type<tc>} {
    %c0 = arith.constant 0 : index
    %c0_0 = arith.constant 0 : index
    %c0_1 = arith.constant 0 : index
    %0 = vector.load %arg1[%c0, %c0_0, %c0_1] : memref<2x64x9xf32, #tpu.memory_space<vmem>>, vector<2x64x9xf32>
    %cst = arith.constant 0.000000e+00 : f32
    %1 = vector.broadcast %cst : f32 to vector<2x32xf32>
    %c0_2 = arith.constant 0 : index
    %c0_3 = arith.constant 0 : index
    %c0_4 = arith.constant 0 : index
    %2 = vector.load %arg2[%c0_2, %c0_3, %c0_4] : memref<8x1x9xf32, #tpu.memory_space<vmem>>, vector<1x1x9xf32>
    %3 = vector.shape_cast %2 : vector<1x1x9xf32> to vector<1x9xf32>
    %4 = vector.shape_cast %3 : vector<1x9xf32> to vector<1x1x9xf32>
    %5 = vector.broadcast %4 : vector<1x1x9xf32> to vector<2x64x9xf32>
    %6 = arith.mulf %0, %5 : vector<2x64x9xf32>
    %cst_5 = arith.constant dense<0.000000e+00> : vector<2x64xf32>
    %7 = vector.multi_reduction <add>, %6, %cst_5 [2] : vector<2x64x9xf32> to vector<2x64xf32>
    %c0_6 = arith.constant 0 : index
    %c0_7 = arith.constant 0 : index
    %c0_8 = arith.constant 0 : index
    %8 = vector.load %arg3[%c0_6, %c0_7, %c0_8] : memref<8x1x1xf32, #tpu.memory_space<vmem>>, vector<1x1x1xf32>
    %9 = vector.shape_cast %8 : vector<1x1x1xf32> to vector<1x1xf32>
    %10 = vector.broadcast %9 : vector<1x1xf32> to vector<2x64xf32>
    %11 = arith.addf %7, %10 : vector<2x64xf32>
    %cst_9 = arith.constant 0.000000e+00 : f32
    %12 = vector.broadcast %cst_9 : f32 to vector<2x64xf32>
    %13 = arith.maximumf %11, %12 : vector<2x64xf32>
    %14 = arith.truncf %13 : vector<2x64xf32> to vector<2x64xbf16>
    %c0_10 = arith.constant 0 : index
    %c0_11 = arith.constant 0 : index
    %c0_12 = arith.constant 0 : index
    %15 = vector.load %arg4[%c0_10, %c0_11, %c0_12] : memref<8x64x32xbf16, #tpu.memory_space<vmem>>, vector<1x64x32xbf16>
    %16 = vector.shape_cast %15 : vector<1x64x32xbf16> to vector<64x32xbf16>
    %cst_13 = arith.constant dense<0.000000e+00> : vector<2x32xf32>
    %17 = tpu.matmul %14, %16, %cst_13 {dimension_numbers = #tpu.dot_dimension_numbers<[1], [0], [0], [1], [0, 0, 1, 1], [], []>} : vector<2x64xbf16>, vector<64x32xbf16>, vector<2x32xf32> -> vector<2x32xf32>
    %18 = arith.addf %1, %17 : vector<2x32xf32>
    %c1 = arith.constant 1 : index
    %c0_14 = arith.constant 0 : index
    %c0_15 = arith.constant 0 : index
    %19 = vector.load %arg2[%c1, %c0_14, %c0_15] : memref<8x1x9xf32, #tpu.memory_space<vmem>>, vector<1x1x9xf32>
    %20 = vector.shape_cast %19 : vector<1x1x9xf32> to vector<1x9xf32>
    %21 = vector.shape_cast %20 : vector<1x9xf32> to vector<1x1x9xf32>
    %22 = vector.broadcast %21 : vector<1x1x9xf32> to vector<2x64x9xf32>
    %23 = arith.mulf %0, %22 : vector<2x64x9xf32>
    %cst_16 = arith.constant dense<0.000000e+00> : vector<2x64xf32>
    %24 = vector.multi_reduction <add>, %23, %cst_16 [2] : vector<2x64x9xf32> to vector<2x64xf32>
    %c1_17 = arith.constant 1 : index
    %c0_18 = arith.constant 0 : index
    %c0_19 = arith.constant 0 : index
    %25 = vector.load %arg3[%c1_17, %c0_18, %c0_19] : memref<8x1x1xf32, #tpu.memory_space<vmem>>, vector<1x1x1xf32>
    %26 = vector.shape_cast %25 : vector<1x1x1xf32> to vector<1x1xf32>
    %27 = vector.broadcast %26 : vector<1x1xf32> to vector<2x64xf32>
    %28 = arith.addf %24, %27 : vector<2x64xf32>
    %cst_20 = arith.constant 0.000000e+00 : f32
    %29 = vector.broadcast %cst_20 : f32 to vector<2x64xf32>
    %30 = arith.maximumf %28, %29 : vector<2x64xf32>
    %31 = arith.truncf %30 : vector<2x64xf32> to vector<2x64xbf16>
    %c1_21 = arith.constant 1 : index
    %c0_22 = arith.constant 0 : index
    %c0_23 = arith.constant 0 : index
    %32 = vector.load %arg4[%c1_21, %c0_22, %c0_23] : memref<8x64x32xbf16, #tpu.memory_space<vmem>>, vector<1x64x32xbf16>
    %33 = vector.shape_cast %32 : vector<1x64x32xbf16> to vector<64x32xbf16>
    %cst_24 = arith.constant dense<0.000000e+00> : vector<2x32xf32>
    %34 = tpu.matmul %31, %33, %cst_24 {dimension_numbers = #tpu.dot_dimension_numbers<[1], [0], [0], [1], [0, 0, 1, 1], [], []>} : vector<2x64xbf16>, vector<64x32xbf16>, vector<2x32xf32> -> vector<2x32xf32>
    %35 = arith.addf %18, %34 : vector<2x32xf32>
    %c2 = arith.constant 2 : index
    %c0_25 = arith.constant 0 : index
    %c0_26 = arith.constant 0 : index
    %36 = vector.load %arg2[%c2, %c0_25, %c0_26] : memref<8x1x9xf32, #tpu.memory_space<vmem>>, vector<1x1x9xf32>
    %37 = vector.shape_cast %36 : vector<1x1x9xf32> to vector<1x9xf32>
    %38 = vector.shape_cast %37 : vector<1x9xf32> to vector<1x1x9xf32>
    %39 = vector.broadcast %38 : vector<1x1x9xf32> to vector<2x64x9xf32>
    %40 = arith.mulf %0, %39 : vector<2x64x9xf32>
    %cst_27 = arith.constant dense<0.000000e+00> : vector<2x64xf32>
    %41 = vector.multi_reduction <add>, %40, %cst_27 [2] : vector<2x64x9xf32> to vector<2x64xf32>
    %c2_28 = arith.constant 2 : index
    %c0_29 = arith.constant 0 : index
    %c0_30 = arith.constant 0 : index
    %42 = vector.load %arg3[%c2_28, %c0_29, %c0_30] : memref<8x1x1xf32, #tpu.memory_space<vmem>>, vector<1x1x1xf32>
    %43 = vector.shape_cast %42 : vector<1x1x1xf32> to vector<1x1xf32>
    %44 = vector.broadcast %43 : vector<1x1xf32> to vector<2x64xf32>
    %45 = arith.addf %41, %44 : vector<2x64xf32>
    %cst_31 = arith.constant 0.000000e+00 : f32
    %46 = vector.broadcast %cst_31 : f32 to vector<2x64xf32>
    %47 = arith.maximumf %45, %46 : vector<2x64xf32>
    %48 = arith.truncf %47 : vector<2x64xf32> to vector<2x64xbf16>
    %c2_32 = arith.constant 2 : index
    %c0_33 = arith.constant 0 : index
    %c0_34 = arith.constant 0 : index
    %49 = vector.load %arg4[%c2_32, %c0_33, %c0_34] : memref<8x64x32xbf16, #tpu.memory_space<vmem>>, vector<1x64x32xbf16>
    %50 = vector.shape_cast %49 : vector<1x64x32xbf16> to vector<64x32xbf16>
    %cst_35 = arith.constant dense<0.000000e+00> : vector<2x32xf32>
    %51 = tpu.matmul %48, %50, %cst_35 {dimension_numbers = #tpu.dot_dimension_numbers<[1], [0], [0], [1], [0, 0, 1, 1], [], []>} : vector<2x64xbf16>, vector<64x32xbf16>, vector<2x32xf32> -> vector<2x32xf32>
    %52 = arith.addf %35, %51 : vector<2x32xf32>
    %c3 = arith.constant 3 : index
    %c0_36 = arith.constant 0 : index
    %c0_37 = arith.constant 0 : index
    %53 = vector.load %arg2[%c3, %c0_36, %c0_37] : memref<8x1x9xf32, #tpu.memory_space<vmem>>, vector<1x1x9xf32>
    %54 = vector.shape_cast %53 : vector<1x1x9xf32> to vector<1x9xf32>
    %55 = vector.shape_cast %54 : vector<1x9xf32> to vector<1x1x9xf32>
    %56 = vector.broadcast %55 : vector<1x1x9xf32> to vector<2x64x9xf32>
    %57 = arith.mulf %0, %56 : vector<2x64x9xf32>
    %cst_38 = arith.constant dense<0.000000e+00> : vector<2x64xf32>
    %58 = vector.multi_reduction <add>, %57, %cst_38 [2] : vector<2x64x9xf32> to vector<2x64xf32>
    %c3_39 = arith.constant 3 : index
    %c0_40 = arith.constant 0 : index
    %c0_41 = arith.constant 0 : index
    %59 = vector.load %arg3[%c3_39, %c0_40, %c0_41] : memref<8x1x1xf32, #tpu.memory_space<vmem>>, vector<1x1x1xf32>
    %60 = vector.shape_cast %59 : vector<1x1x1xf32> to vector<1x1xf32>
    %61 = vector.broadcast %60 : vector<1x1xf32> to vector<2x64xf32>
    %62 = arith.addf %58, %61 : vector<2x64xf32>
    %cst_42 = arith.constant 0.000000e+00 : f32
    %63 = vector.broadcast %cst_42 : f32 to vector<2x64xf32>
    %64 = arith.maximumf %62, %63 : vector<2x64xf32>
    %65 = arith.truncf %64 : vector<2x64xf32> to vector<2x64xbf16>
    %c3_43 = arith.constant 3 : index
    %c0_44 = arith.constant 0 : index
    %c0_45 = arith.constant 0 : index
    %66 = vector.load %arg4[%c3_43, %c0_44, %c0_45] : memref<8x64x32xbf16, #tpu.memory_space<vmem>>, vector<1x64x32xbf16>
    %67 = vector.shape_cast %66 : vector<1x64x32xbf16> to vector<64x32xbf16>
    %cst_46 = arith.constant dense<0.000000e+00> : vector<2x32xf32>
    %68 = tpu.matmul %65, %67, %cst_46 {dimension_numbers = #tpu.dot_dimension_numbers<[1], [0], [0], [1], [0, 0, 1, 1], [], []>} : vector<2x64xbf16>, vector<64x32xbf16>, vector<2x32xf32> -> vector<2x32xf32>
    %69 = arith.addf %52, %68 : vector<2x32xf32>
    %c4 = arith.constant 4 : index
    %c0_47 = arith.constant 0 : index
    %c0_48 = arith.constant 0 : index
    %70 = vector.load %arg2[%c4, %c0_47, %c0_48] : memref<8x1x9xf32, #tpu.memory_space<vmem>>, vector<1x1x9xf32>
    %71 = vector.shape_cast %70 : vector<1x1x9xf32> to vector<1x9xf32>
    %72 = vector.shape_cast %71 : vector<1x9xf32> to vector<1x1x9xf32>
    %73 = vector.broadcast %72 : vector<1x1x9xf32> to vector<2x64x9xf32>
    %74 = arith.mulf %0, %73 : vector<2x64x9xf32>
    %cst_49 = arith.constant dense<0.000000e+00> : vector<2x64xf32>
    %75 = vector.multi_reduction <add>, %74, %cst_49 [2] : vector<2x64x9xf32> to vector<2x64xf32>
    %c4_50 = arith.constant 4 : index
    %c0_51 = arith.constant 0 : index
    %c0_52 = arith.constant 0 : index
    %76 = vector.load %arg3[%c4_50, %c0_51, %c0_52] : memref<8x1x1xf32, #tpu.memory_space<vmem>>, vector<1x1x1xf32>
    %77 = vector.shape_cast %76 : vector<1x1x1xf32> to vector<1x1xf32>
    %78 = vector.broadcast %77 : vector<1x1xf32> to vector<2x64xf32>
    %79 = arith.addf %75, %78 : vector<2x64xf32>
    %cst_53 = arith.constant 0.000000e+00 : f32
    %80 = vector.broadcast %cst_53 : f32 to vector<2x64xf32>
    %81 = arith.maximumf %79, %80 : vector<2x64xf32>
    %82 = arith.truncf %81 : vector<2x64xf32> to vector<2x64xbf16>
    %c4_54 = arith.constant 4 : index
    %c0_55 = arith.constant 0 : index
    %c0_56 = arith.constant 0 : index
    %83 = vector.load %arg4[%c4_54, %c0_55, %c0_56] : memref<8x64x32xbf16, #tpu.memory_space<vmem>>, vector<1x64x32xbf16>
    %84 = vector.shape_cast %83 : vector<1x64x32xbf16> to vector<64x32xbf16>
    %cst_57 = arith.constant dense<0.000000e+00> : vector<2x32xf32>
    %85 = tpu.matmul %82, %84, %cst_57 {dimension_numbers = #tpu.dot_dimension_numbers<[1], [0], [0], [1], [0, 0, 1, 1], [], []>} : vector<2x64xbf16>, vector<64x32xbf16>, vector<2x32xf32> -> vector<2x32xf32>
    %86 = arith.addf %69, %85 : vector<2x32xf32>
    %c5 = arith.constant 5 : index
    %c0_58 = arith.constant 0 : index
    %c0_59 = arith.constant 0 : index
    %87 = vector.load %arg2[%c5, %c0_58, %c0_59] : memref<8x1x9xf32, #tpu.memory_space<vmem>>, vector<1x1x9xf32>
    %88 = vector.shape_cast %87 : vector<1x1x9xf32> to vector<1x9xf32>
    %89 = vector.shape_cast %88 : vector<1x9xf32> to vector<1x1x9xf32>
    %90 = vector.broadcast %89 : vector<1x1x9xf32> to vector<2x64x9xf32>
    %91 = arith.mulf %0, %90 : vector<2x64x9xf32>
    %cst_60 = arith.constant dense<0.000000e+00> : vector<2x64xf32>
    %92 = vector.multi_reduction <add>, %91, %cst_60 [2] : vector<2x64x9xf32> to vector<2x64xf32>
    %c5_61 = arith.constant 5 : index
    %c0_62 = arith.constant 0 : index
    %c0_63 = arith.constant 0 : index
    %93 = vector.load %arg3[%c5_61, %c0_62, %c0_63] : memref<8x1x1xf32, #tpu.memory_space<vmem>>, vector<1x1x1xf32>
    %94 = vector.shape_cast %93 : vector<1x1x1xf32> to vector<1x1xf32>
    %95 = vector.broadcast %94 : vector<1x1xf32> to vector<2x64xf32>
    %96 = arith.addf %92, %95 : vector<2x64xf32>
    %cst_64 = arith.constant 0.000000e+00 : f32
    %97 = vector.broadcast %cst_64 : f32 to vector<2x64xf32>
    %98 = arith.maximumf %96, %97 : vector<2x64xf32>
    %99 = arith.truncf %98 : vector<2x64xf32> to vector<2x64xbf16>
    %c5_65 = arith.constant 5 : index
    %c0_66 = arith.constant 0 : index
    %c0_67 = arith.constant 0 : index
    %100 = vector.load %arg4[%c5_65, %c0_66, %c0_67] : memref<8x64x32xbf16, #tpu.memory_space<vmem>>, vector<1x64x32xbf16>
    %101 = vector.shape_cast %100 : vector<1x64x32xbf16> to vector<64x32xbf16>
    %cst_68 = arith.constant dense<0.000000e+00> : vector<2x32xf32>
    %102 = tpu.matmul %99, %101, %cst_68 {dimension_numbers = #tpu.dot_dimension_numbers<[1], [0], [0], [1], [0, 0, 1, 1], [], []>} : vector<2x64xbf16>, vector<64x32xbf16>, vector<2x32xf32> -> vector<2x32xf32>
    %103 = arith.addf %86, %102 : vector<2x32xf32>
    %c6 = arith.constant 6 : index
    %c0_69 = arith.constant 0 : index
    %c0_70 = arith.constant 0 : index
    %104 = vector.load %arg2[%c6, %c0_69, %c0_70] : memref<8x1x9xf32, #tpu.memory_space<vmem>>, vector<1x1x9xf32>
    %105 = vector.shape_cast %104 : vector<1x1x9xf32> to vector<1x9xf32>
    %106 = vector.shape_cast %105 : vector<1x9xf32> to vector<1x1x9xf32>
    %107 = vector.broadcast %106 : vector<1x1x9xf32> to vector<2x64x9xf32>
    %108 = arith.mulf %0, %107 : vector<2x64x9xf32>
    %cst_71 = arith.constant dense<0.000000e+00> : vector<2x64xf32>
    %109 = vector.multi_reduction <add>, %108, %cst_71 [2] : vector<2x64x9xf32> to vector<2x64xf32>
    %c6_72 = arith.constant 6 : index
    %c0_73 = arith.constant 0 : index
    %c0_74 = arith.constant 0 : index
    %110 = vector.load %arg3[%c6_72, %c0_73, %c0_74] : memref<8x1x1xf32, #tpu.memory_space<vmem>>, vector<1x1x1xf32>
    %111 = vector.shape_cast %110 : vector<1x1x1xf32> to vector<1x1xf32>
    %112 = vector.broadcast %111 : vector<1x1xf32> to vector<2x64xf32>
    %113 = arith.addf %109, %112 : vector<2x64xf32>
    %cst_75 = arith.constant 0.000000e+00 : f32
    %114 = vector.broadcast %cst_75 : f32 to vector<2x64xf32>
    %115 = arith.maximumf %113, %114 : vector<2x64xf32>
    %116 = arith.truncf %115 : vector<2x64xf32> to vector<2x64xbf16>
    %c6_76 = arith.constant 6 : index
    %c0_77 = arith.constant 0 : index
    %c0_78 = arith.constant 0 : index
    %117 = vector.load %arg4[%c6_76, %c0_77, %c0_78] : memref<8x64x32xbf16, #tpu.memory_space<vmem>>, vector<1x64x32xbf16>
    %118 = vector.shape_cast %117 : vector<1x64x32xbf16> to vector<64x32xbf16>
    %cst_79 = arith.constant dense<0.000000e+00> : vector<2x32xf32>
    %119 = tpu.matmul %116, %118, %cst_79 {dimension_numbers = #tpu.dot_dimension_numbers<[1], [0], [0], [1], [0, 0, 1, 1], [], []>} : vector<2x64xbf16>, vector<64x32xbf16>, vector<2x32xf32> -> vector<2x32xf32>
    %120 = arith.addf %103, %119 : vector<2x32xf32>
    %c7 = arith.constant 7 : index
    %c0_80 = arith.constant 0 : index
    %c0_81 = arith.constant 0 : index
    %121 = vector.load %arg2[%c7, %c0_80, %c0_81] : memref<8x1x9xf32, #tpu.memory_space<vmem>>, vector<1x1x9xf32>
    %122 = vector.shape_cast %121 : vector<1x1x9xf32> to vector<1x9xf32>
    %123 = vector.shape_cast %122 : vector<1x9xf32> to vector<1x1x9xf32>
    %124 = vector.broadcast %123 : vector<1x1x9xf32> to vector<2x64x9xf32>
    %125 = arith.mulf %0, %124 : vector<2x64x9xf32>
    %cst_82 = arith.constant dense<0.000000e+00> : vector<2x64xf32>
    %126 = vector.multi_reduction <add>, %125, %cst_82 [2] : vector<2x64x9xf32> to vector<2x64xf32>
    %c7_83 = arith.constant 7 : index
    %c0_84 = arith.constant 0 : index
    %c0_85 = arith.constant 0 : index
    %127 = vector.load %arg3[%c7_83, %c0_84, %c0_85] : memref<8x1x1xf32, #tpu.memory_space<vmem>>, vector<1x1x1xf32>
    %128 = vector.shape_cast %127 : vector<1x1x1xf32> to vector<1x1xf32>
    %129 = vector.broadcast %128 : vector<1x1xf32> to vector<2x64xf32>
    %130 = arith.addf %126, %129 : vector<2x64xf32>
    %cst_86 = arith.constant 0.000000e+00 : f32
    %131 = vector.broadcast %cst_86 : f32 to vector<2x64xf32>
    %132 = arith.maximumf %130, %131 : vector<2x64xf32>
    %133 = arith.truncf %132 : vector<2x64xf32> to vector<2x64xbf16>
    %c7_87 = arith.constant 7 : index
    %c0_88 = arith.constant 0 : index
    %c0_89 = arith.constant 0 : index
    %134 = vector.load %arg4[%c7_87, %c0_88, %c0_89] : memref<8x64x32xbf16, #tpu.memory_space<vmem>>, vector<1x64x32xbf16>
    %135 = vector.shape_cast %134 : vector<1x64x32xbf16> to vector<64x32xbf16>
    %cst_90 = arith.constant dense<0.000000e+00> : vector<2x32xf32>
    %136 = tpu.matmul %133, %135, %cst_90 {dimension_numbers = #tpu.dot_dimension_numbers<[1], [0], [0], [1], [0, 0, 1, 1], [], []>} : vector<2x64xbf16>, vector<64x32xbf16>, vector<2x32xf32> -> vector<2x32xf32>
    %137 = arith.addf %120, %136 : vector<2x32xf32>
    %c0_91 = arith.constant 0 : index
    %c0_92 = arith.constant 0 : index
    %138 = vector.load %arg5[%c0_91, %c0_92] : memref<1x32xf32, #tpu.memory_space<vmem>>, vector<1x32xf32>
    %139 = vector.broadcast %138 : vector<1x32xf32> to vector<2x32xf32>
    %140 = arith.addf %137, %139 : vector<2x32xf32>
    %c0_93 = arith.constant 0 : index
    %c0_94 = arith.constant 0 : index
    %141 = vector.load %arg0[%c0_93, %c0_94] : memref<2x8xi32, #tpu.memory_space<vmem>>, vector<2x8xi32>
    %142 = tpu.iota {dimensions = array<i32: 1>} : vector<2x64xi32>
    %cst_95 = arith.constant 0.000000e+00 : f32
    %143 = vector.broadcast %cst_95 : f32 to vector<2x64xf32>
    %144 = vector.extract_strided_slice %141 {offsets = [0, 0], sizes = [2, 1], strides = [1, 1]} : vector<2x8xi32> to vector<2x1xi32>
    %145 = vector.broadcast %144 : vector<2x1xi32> to vector<2x64xi32>
    %146 = arith.cmpi eq, %142, %145 : vector<2x64xi32>
    %147 = arith.extui %146 : vector<2x64xi1> to vector<2x64xi32>
    %148 = arith.sitofp %147 : vector<2x64xi32> to vector<2x64xf32>
    %149 = arith.addf %143, %148 : vector<2x64xf32>
    %150 = vector.extract_strided_slice %141 {offsets = [0, 1], sizes = [2, 1], strides = [1, 1]} : vector<2x8xi32> to vector<2x1xi32>
    %151 = vector.broadcast %150 : vector<2x1xi32> to vector<2x64xi32>
    %152 = arith.cmpi eq, %142, %151 : vector<2x64xi32>
    %153 = arith.extui %152 : vector<2x64xi1> to vector<2x64xi32>
    %154 = arith.sitofp %153 : vector<2x64xi32> to vector<2x64xf32>
    %155 = arith.addf %149, %154 : vector<2x64xf32>
    %156 = vector.extract_strided_slice %141 {offsets = [0, 2], sizes = [2, 1], strides = [1, 1]} : vector<2x8xi32> to vector<2x1xi32>
    %157 = vector.broadcast %156 : vector<2x1xi32> to vector<2x64xi32>
    %158 = arith.cmpi eq, %142, %157 : vector<2x64xi32>
    %159 = arith.extui %158 : vector<2x64xi1> to vector<2x64xi32>
    %160 = arith.sitofp %159 : vector<2x64xi32> to vector<2x64xf32>
    %161 = arith.addf %155, %160 : vector<2x64xf32>
    %162 = vector.extract_strided_slice %141 {offsets = [0, 3], sizes = [2, 1], strides = [1, 1]} : vector<2x8xi32> to vector<2x1xi32>
    %163 = vector.broadcast %162 : vector<2x1xi32> to vector<2x64xi32>
    %164 = arith.cmpi eq, %142, %163 : vector<2x64xi32>
    %165 = arith.extui %164 : vector<2x64xi1> to vector<2x64xi32>
    %166 = arith.sitofp %165 : vector<2x64xi32> to vector<2x64xf32>
    %167 = arith.addf %161, %166 : vector<2x64xf32>
    %168 = vector.extract_strided_slice %141 {offsets = [0, 4], sizes = [2, 1], strides = [1, 1]} : vector<2x8xi32> to vector<2x1xi32>
    %169 = vector.broadcast %168 : vector<2x1xi32> to vector<2x64xi32>
    %170 = arith.cmpi eq, %142, %169 : vector<2x64xi32>
    %171 = arith.extui %170 : vector<2x64xi1> to vector<2x64xi32>
    %172 = arith.sitofp %171 : vector<2x64xi32> to vector<2x64xf32>
    %173 = arith.addf %167, %172 : vector<2x64xf32>
    %174 = vector.extract_strided_slice %141 {offsets = [0, 5], sizes = [2, 1], strides = [1, 1]} : vector<2x8xi32> to vector<2x1xi32>
    %175 = vector.broadcast %174 : vector<2x1xi32> to vector<2x64xi32>
    %176 = arith.cmpi eq, %142, %175 : vector<2x64xi32>
    %177 = arith.extui %176 : vector<2x64xi1> to vector<2x64xi32>
    %178 = arith.sitofp %177 : vector<2x64xi32> to vector<2x64xf32>
    %179 = arith.addf %173, %178 : vector<2x64xf32>
    %180 = vector.extract_strided_slice %141 {offsets = [0, 6], sizes = [2, 1], strides = [1, 1]} : vector<2x8xi32> to vector<2x1xi32>
    %181 = vector.broadcast %180 : vector<2x1xi32> to vector<2x64xi32>
    %182 = arith.cmpi eq, %142, %181 : vector<2x64xi32>
    %183 = arith.extui %182 : vector<2x64xi1> to vector<2x64xi32>
    %184 = arith.sitofp %183 : vector<2x64xi32> to vector<2x64xf32>
    %185 = arith.addf %179, %184 : vector<2x64xf32>
    %186 = vector.extract_strided_slice %141 {offsets = [0, 7], sizes = [2, 1], strides = [1, 1]} : vector<2x8xi32> to vector<2x1xi32>
    %187 = vector.broadcast %186 : vector<2x1xi32> to vector<2x64xi32>
    %188 = arith.cmpi eq, %142, %187 : vector<2x64xi32>
    %189 = arith.extui %188 : vector<2x64xi1> to vector<2x64xi32>
    %190 = arith.sitofp %189 : vector<2x64xi32> to vector<2x64xf32>
    %191 = arith.addf %185, %190 : vector<2x64xf32>
    %192 = arith.truncf %191 : vector<2x64xf32> to vector<2x64xbf16>
    %c0_96 = arith.constant 0 : index
    %c0_97 = arith.constant 0 : index
    %193 = vector.load %arg6[%c0_96, %c0_97] : memref<64x32xbf16, #tpu.memory_space<vmem>>, vector<64x32xbf16>
    %cst_98 = arith.constant dense<0.000000e+00> : vector<2x32xf32>
    %194 = tpu.matmul %192, %193, %cst_98 {dimension_numbers = #tpu.dot_dimension_numbers<[1], [0], [0], [1], [0, 0, 1, 1], [], []>} : vector<2x64xbf16>, vector<64x32xbf16>, vector<2x32xf32> -> vector<2x32xf32>
    %195 = arith.truncf %194 : vector<2x32xf32> to vector<2x32xbf16>
    %c0_99 = arith.constant 0 : index
    %c0_100 = arith.constant 0 : index
    %196 = vector.load %arg7[%c0_99, %c0_100] : memref<32x32xbf16, #tpu.memory_space<vmem>>, vector<32x32xbf16>
    %cst_101 = arith.constant dense<0.000000e+00> : vector<2x32xf32>
    %197 = tpu.matmul %195, %196, %cst_101 {dimension_numbers = #tpu.dot_dimension_numbers<[1], [0], [0], [1], [0, 0, 1, 1], [], []>} : vector<2x32xbf16>, vector<32x32xbf16>, vector<2x32xf32> -> vector<2x32xf32>
    %c0_102 = arith.constant 0 : index
    %c0_103 = arith.constant 0 : index
    %198 = vector.load %arg8[%c0_102, %c0_103] : memref<1x32xf32, #tpu.memory_space<vmem>>, vector<1x32xf32>
    %199 = vector.broadcast %198 : vector<1x32xf32> to vector<2x32xf32>
    %200 = arith.addf %197, %199 : vector<2x32xf32>
    %201 = arith.truncf %140 : vector<2x32xf32> to vector<2x32xbf16>
    %202 = arith.truncf %200 : vector<2x32xf32> to vector<2x32xbf16>
    %cst_104 = arith.constant dense<0.000000e+00> : vector<2x2xf32>
    %203 = tpu.matmul %201, %202, %cst_104 {dimension_numbers = #tpu.dot_dimension_numbers<[1], [1], [0], [0], [0, 0, 1, 0], [], []>} : vector<2x32xbf16>, vector<2x32xbf16>, vector<2x2xf32> -> vector<2x2xf32>
    %c0_105 = arith.constant 0 : index
    %c0_106 = arith.constant 0 : index
    %204 = vector.load %arg9[%c0_105, %c0_106] : memref<2x2xf32, #tpu.memory_space<vmem>>, vector<2x2xf32>
    tpu.vector_store %arg9[%c0_105, %c0_106], %203 {strides = array<i32>} : memref<2x2xf32, #tpu.memory_space<vmem>>, vector<2x2xf32>,
    return
  }
}

</mosaic_0001>

<bundles_post_ra>
// kernel: clip_forward.1
= control target key start
LH: loop header
LB: loop body
LE: loop exit
PB: predicated region body
PF: predicated region fallthrough
CT: control target
= control target key end

     0   :  { %vm73_vm0 = vcmask 72704   ;;  %v3188_v7 = vmov 0   ;;  %s4706_s0 = inlined_call_operand.vmem [shape: s32[2,8], index: 0, kind: input, shape index: {}]   ;;  %s4707_s1 = inlined_call_operand.vmem [shape: f32[2,64,9], index: 1, kind: input, shape index: {}]   ;;  %s4708_s2 = inlined_call_operand.vmem [shape: f32[8,1,9], index: 2, kind: input, shape index: {}]   ;;  %s4709_s3 = inlined_call_operand.vmem [shape: f32[8,1,1], index: 3, kind: input, shape index: {}]   ;;  %s4710_s4 = inlined_call_operand.vmem [shape: bf16[8,64,32], index: 4, kind: input, shape index: {}]   ;;  %s4711_s5 = inlined_call_operand.vmem [shape: f32[1,32], index: 5, kind: input, shape index: {}]   ;;  %s4712_s6 = inlined_call_operand.vmem [shape: bf16[64,32], index: 6, kind: input, shape index: {}]   ;;  %s4713_s7 = inlined_call_operand.vmem [shape: bf16[32,32], index: 7, kind: input, shape index: {}]   ;;  %s4714_s8 = inlined_call_operand.vmem [shape: f32[1,32], index: 8, kind: input, shape index: {}]   ;;  %s4715_s9 = inlined_call_operand.hbm [shape: f32[2,2], index: 9, kind: output, shape index: {}]  }
   0x1   :  { %v3252_v0 = vld [vmem:[%s4707_s1 + $0x40] sm:$0xff]  ;;  %v3267_v5 = vld [vmem:[%s4707_s1 + $0x48] sm:$0xff]  ;;  %3097 = vset.pattern.permute.xlu0 %v3188_v7  ;;  %3098 = vset.pattern.permute.xlu1 %v3188_v7  ;;  %v3281_v10 = vld [vmem:[%s4707_s1 + $0x18] sm:$0xff] }
   0x2   :  { %v2772_v1 = vld [vmem:[%s4708_s2 + $0x1] ss:$0 sm:$0xff]  ;;  %v3272_v6 = vld [vmem:[%s4707_s1 + $0x8] sm:$0xff]  ;;  %v3286_v11 = vld [vmem:[%s4707_s1 + $0x10] sm:$0xff] }
   0x3   :  { %v3260_v2 = vld [vmem:[%s4707_s1] sm:$0xff]  ;;  %v196_v3 = vmul.f32 %v2772_v1, %v3252_v0  ;;  %v197_v8 = vmul.f32 %v2772_v1, %v3267_v5  ;;  %v189_v9 = vmul.f32 %v2772_v1, %v3272_v6  ;;  %v191_v16 = vmul.f32 %v2772_v1, %v3281_v10  ;;  %v3297_v18 = vld [vmem:[%s4707_s1 + $0x58] sm:$0xff]  ;;  %v3302_v19 = vld [vmem:[%s4707_s1 + $0x50] sm:$0xff] }
   0x4   :  { %v188_v4 = vmul.f32 %v2772_v1, %v3260_v2  ;;  %v190_v17 = vmul.f32 %v2772_v1, %v3286_v11  ;;  %v3307_v20 = vld [vmem:[%s4707_s1 + $0x28] sm:$0xff]  ;;  %v199_v23 = vmul.f32 %v2772_v1, %v3297_v18  ;;  %v198_v24 = vmul.f32 %v2772_v1, %v3302_v19  ;;  %v3316_v25 = vld [vmem:[%s4707_s1 + $0x20] sm:$0xff]  ;;  %v3335_v32 = vld [vmem:[%s4707_s1 + $0x38] sm:$0xff] }
   0x5   :  { %v228_v12 = vsel %vm73_vm0, %v196_v3, 0.0  ;;  %v231_v14 = vsel %vm73_vm0, %v197_v8, 0.0  ;;  %v207_v15 = vsel %vm73_vm0, %v189_v9, 0.0  ;;  %v213_v21 = vsel %vm73_vm0, %v191_v16, 0.0  ;;  %v3321_v26 = vld [vmem:[%s4707_s1 + $0x68] sm:$0xff]  ;;  %v3330_v31 = vld [vmem:[%s4707_s1 + $0x60] sm:$0xff] }
   0x6   :  { %v204_v13 = vsel %vm73_vm0, %v188_v4, 0.0  ;;  %229 = vadd.xlane.f32.xlu1 %v228_v12  ;;  %v210_v22 = vsel %vm73_vm0, %v190_v17, 0.0  ;;  %v237_v27 = vsel %vm73_vm0, %v199_v23, 0.0  ;;  %v234_v28 = vsel %vm73_vm0, %v198_v24, 0.0  ;;  %v3344_v37 = vld [vmem:[%s4707_s1 + $0x30] sm:$0xff]  ;;  %v3349_v38 = vld [vmem:[%s4707_s1 + $0x78] sm:$0xff] }
   0x7   :  { %205 = vadd.xlane.f32.xlu0 %v204_v13  ;;  %v193_v29 = vmul.f32 %v2772_v1, %v3307_v20  ;;  %v192_v30 = vmul.f32 %v2772_v1, %v3316_v25  ;;  %v201_v35 = vmul.f32 %v2772_v1, %v3321_v26  ;;  %v200_v36 = vmul.f32 %v2772_v1, %v3330_v31  ;;  %v3354_v39 = vld [vmem:[%s4707_s1 + $0x70] sm:$0xff]  ;;  %v3367_v48 = vld [vmem:[%s4708_s2 + $0x2] ss:$0 sm:$0xff] }
   0x8   :  { %v195_v42 = vmul.f32 %v2772_v1, %v3335_v32  ;;  %v194_v43 = vmul.f32 %v2772_v1, %v3344_v37  ;;  %v203_v44 = vmul.f32 %v2772_v1, %v3349_v38  ;;  %v202_v45 = vmul.f32 %v2772_v1, %v3354_v39 }
   0x9   :  { %v219_v33 = vsel %vm73_vm0, %v193_v29, 0.0  ;;  %v216_v34 = vsel %vm73_vm0, %v192_v30, 0.0  ;;  %v243_v40 = vsel %vm73_vm0, %v201_v35, 0.0  ;;  %v240_v41 = vsel %vm73_vm0, %v200_v36, 0.0 }
   0xa   :  { %232 = vadd.xlane.f32.xlu1 %v231_v14  ;;  %v225_v46 = vsel %vm73_vm0, %v195_v42, 0.0  ;;  %v222_v47 = vsel %vm73_vm0, %v194_v43, 0.0  ;;  %v249_v49 = vsel %vm73_vm0, %v203_v44, 0.0  ;;  %v246_v50 = vsel %vm73_vm0, %v202_v45, 0.0 }
   0xb   :  { %208 = vadd.xlane.f32.xlu0 %v207_v15  ;;  %v680_v51 = vmul.f32 %v3367_v48, %v3260_v2  ;;  %v681_v53 = vmul.f32 %v3367_v48, %v3272_v6  ;;  %v688_v54 = vmul.f32 %v3367_v48, %v3252_v0  ;;  %v689_v57 = vmul.f32 %v3367_v48, %v3267_v5 }
   0xd   :  { %v696_v52 = vsel %vm73_vm0, %v680_v51, 0.0  ;;  %v699_v55 = vsel %vm73_vm0, %v681_v53, 0.0  ;;  %v720_v56 = vsel %vm73_vm0, %v688_v54, 0.0 }
   0xe   :  { %214 = vadd.xlane.f32.xlu1 %v213_v21 }
   0xf   :  { %211 = vadd.xlane.f32.xlu0 %v210_v22 }
  0x12   :  { %238 = vadd.xlane.f32.xlu1 %v237_v27 }
  0x13   :  { %235 = vadd.xlane.f32.xlu0 %v234_v28 }
  0x16   :  { %220 = vadd.xlane.f32.xlu1 %v219_v33 }
  0x17   :  { %217 = vadd.xlane.f32.xlu0 %v216_v34 }
  0x1a   :  { %244 = vadd.xlane.f32.xlu1 %v243_v40 }
  0x1b   :  { %241 = vadd.xlane.f32.xlu0 %v240_v41 }
  0x1e   :  { %226 = vadd.xlane.f32.xlu1 %v225_v46 }
  0x1f   :  { %223 = vadd.xlane.f32.xlu0 %v222_v47 }
  0x22   :  { %250 = vadd.xlane.f32.xlu1 %v249_v49 }
  0x23   :  { %247 = vadd.xlane.f32.xlu0 %v246_v50 }
  0x26   :  { %697 = vadd.xlane.f32.xlu1 %v696_v52 }
  0x2a   :  { %700 = vadd.xlane.f32.xlu1 %v699_v55 }
  0x2e   :  { %721 = vadd.xlane.f32.xlu1 %v720_v56 }
  0x2f   :  { %14 = vsyncpa [#allocation3], 0  ;;  %v723_v58 = vsel %vm73_vm0, %v689_v57, 0.0  ;;  %v682_v59 = vmul.f32 %v3367_v48, %v3286_v11  ;;  %v683_v61 = vmul.f32 %v3367_v48, %v3281_v10  ;;  %v2774_v62 = vld [vmem:[%s4709_s3 + $0x1] ss:$0 sm:$0xff]  ;;  %v690_v1 = vmul.f32 %v3367_v48, %v3302_v19  ;;  %v3110_v15 = vld [vmem:[%s4710_s4 + $0x28] sm:$0xff]  }
  0x30   :  { %v691_v4 = vmul.f32 %v3367_v48, %v3297_v18  ;;  %v3109_v8 = vld [vmem:[%s4710_s4 + $0x20] sm:$0xff]   ;;  %v3189_v9 = vmov 2   ;;  %v4717_v12 = vmov 0.0   ;;  %v684_v14 = vmul.f32 %v3367_v48, %v3316_v25  ;;  %v3111_v21 = vld [vmem:[%s4710_s4 + $0x30] sm:$0xff]   ;;  %v3112_v24 = vld [vmem:[%s4710_s4 + $0x38] sm:$0xff]  }
  0x31   :  { %v702_v60 = vsel %vm73_vm0, %v682_v59, 0.0  ;;  %v705_v63 = vsel %vm73_vm0, %v683_v61, 0.0  ;;  %v726_v3 = vsel %vm73_vm0, %v690_v1, 0.0  ;;  %2964 = vmatprep.subr.bf16.mxu0 %v4717_v12  ;;  %2976 = vmatprep.subr.bf16.mxu1 %v4717_v12  ;;  %v685_v17 = vmul.f32 %v3367_v48, %v3307_v20  ;;  %v3439_v34 = vld [vmem:[%s4708_s2 + $0x4] ss:$0 sm:$0xff] }
  0x32   :  { %724 = vadd.xlane.f32.xlu1 %v723_v58  ;;  %2965 = vmatpush3.bf16.msra.mxu0 %v3109_v8  ;;  %v729_v13 = vsel %vm73_vm0, %v691_v4, 0.0  ;;  %v708_v16 = vsel %vm73_vm0, %v684_v14, 0.0  ;;  %v692_v23 = vmul.f32 %v3367_v48, %v3330_v31  ;;  %vm3191_vm1 = vmmov 0   ;;  %v2796_v55 = vld [vmem:[%s4709_s3 + $0x2] ss:$0 sm:$0xff] }
  0x33   :  { %2966 = vmatprep.subr.bf16.mxu0 %v4717_v12  ;;  %v711_v22 = vsel %vm73_vm0, %v685_v17, 0.0  ;;  %2972 = vmatprep.mubr.msk.bf16.mxu0 %vm3191_vm1, %v4717_v12  ;;  %v686_v28 = vmul.f32 %v3367_v48, %v3344_v37  ;;  %v687_v30 = vmul.f32 %v3367_v48, %v3335_v32  ;;  %v693_v33 = vmul.f32 %v3367_v48, %v3321_v26 }
  0x34   :  { %2984 = vmatprep.mubr.msk.bf16.mxu1 %vm3191_vm1, %v4717_v12  ;;  %v732_v27 = vsel %vm73_vm0, %v692_v23, 0.0  ;;  %v694_v36 = vmul.f32 %v3367_v48, %v3354_v39  ;;  %v1288_v41 = vmul.f32 %v3439_v34, %v3260_v2  ;;  %v695_v43 = vmul.f32 %v3367_v48, %v3349_v38 }
  0x35   :  { %v714_v29 = vsel %vm73_vm0, %v686_v28, 0.0  ;;  %v717_v35 = vsel %vm73_vm0, %v687_v30, 0.0  ;;  %v735_v40 = vsel %vm73_vm0, %v693_v33, 0.0  ;;  %v1296_v45 = vmul.f32 %v3439_v34, %v3252_v0 }
  0x36   :  { %703 = vadd.xlane.f32.xlu1 %v702_v60  ;;  %2967 = vmatpush3.bf16.msra.mxu0 %v3110_v15  ;;  %v738_v42 = vsel %vm73_vm0, %v694_v36, 0.0  ;;  %v1304_v44 = vsel %vm73_vm0, %v1288_v41, 0.0  ;;  %v741_v46 = vsel %vm73_vm0, %v695_v43, 0.0  ;;  %v1297_v49 = vmul.f32 %v3439_v34, %v3267_v5 }
  0x37   :  { %2968 = vmatprep.subr.bf16.mxu0 %v4717_v12  ;;  %v1328_v47 = vsel %vm73_vm0, %v1296_v45, 0.0  ;;  %v1290_v48 = vmul.f32 %v3439_v34, %v3286_v11  ;;  %v1291_v52 = vmul.f32 %v3439_v34, %v3281_v10  ;;  %v1298_v54 = vmul.f32 %v3439_v34, %v3302_v19 }
  0x38   :  { %v1331_v50 = vsel %vm73_vm0, %v1297_v49, 0.0  ;;  %v1299_v57 = vmul.f32 %v3439_v34, %v3297_v18  ;;  %v1292_v59 = vmul.f32 %v3439_v34, %v3316_v25  ;;  %v1293_v61 = vmul.f32 %v3439_v34, %v3307_v20 }
  0x39   :  { %260 = vperm.xlu0 %3097, %v2774_v62   ;;  %v1310_v51 = vsel %vm73_vm0, %v1290_v48, 0.0  ;;  %v1313_v53 = vsel %vm73_vm0, %v1291_v52, 0.0  ;;  %v1334_v56 = vsel %vm73_vm0, %v1298_v54, 0.0  ;;  %v1302_v8 = vmul.f32 %v3439_v34, %v3354_v39 }
  0x3a   :  { %706 = vadd.xlane.f32.xlu1 %v705_v63  ;;  %2969 = vmatpush3.bf16.msra.mxu0 %v3111_v21  ;;  %v1337_v58 = vsel %vm73_vm0, %v1299_v57, 0.0  ;;  %v1316_v60 = vsel %vm73_vm0, %v1292_v59, 0.0  ;;  %v1319_v62 = vsel %vm73_vm0, %v1293_v61, 0.0  ;;  %v1300_v63 = vmul.f32 %v3439_v34, %v3330_v31 }
  0x3b   :  { %2970 = vmatprep.subr.bf16.mxu0 %v4717_v12  ;;  %v1289_v21 = vmul.f32 %v3439_v34, %v3272_v6  ;;  %v1301_v23 = vmul.f32 %v3439_v34, %v3321_v26  ;;  %vm347_vm2 = vcmask 130112   ;;  %vm354_vm3 = vcmask 195712  }
  0x3c   :  { %v1340_v1 = vsel %vm73_vm0, %v1300_v63, 0.0  ;;  %vm361_vm4 = vcmask 261312   ;;  %vm368_vm5 = vcmask 326912   ;;  %vm375_vm6 = vcmask 392512  }
  0x3d   :  { %3100 = vset.pattern.permute.xlu0 %v3189_v9  ;;  %v3490_v9 = vld [vmem:[%s4708_s2 + $0x6] ss:$0 sm:$0xff]  ;;  %v1343_v28 = vsel %vm73_vm0, %v1301_v23, 0.0  ;;  %vm382_vm7 = vcmask 458112   ;;  %vm389_vm8 = vcmask 523712   ;;  %vm430_vm9 = vcmask 1041409  }
  0x3e   :  { %727 = vadd.xlane.f32.xlu1 %v726_v3  ;;  %2971 = vmatpush3.bf16.msra.mxu0 %v3112_v24  ;;  %v1294_v3 = vmul.f32 %v3439_v34, %v3344_v37  ;;  %v1899_v14 = vmul.f32 %v3490_v9, %v3281_v10  ;;  %v1904_v48 = vmul.f32 %v3490_v9, %v3252_v0  ;;  %vm457_vm10 = vcmask 523264  }
  0x3f   :  { %2988 = vmatprep.subr.bf16.mxu0 %v4717_v12  ;;  %v1905_v54 = vmul.f32 %v3490_v9, %v3267_v5  ;;  %v1898_v61 = vmul.f32 %v3490_v9, %v3286_v11 }
  0x40   :  { %v1322_v4 = vsel %vm73_vm0, %v1294_v3, 0.0  ;;  %v1921_v15 = vsel %vm73_vm0, %v1899_v14, 0.0  ;;  %v2864_v3 = vld [vmem:[%s4709_s3 + $0x6] ss:$0 sm:$0xff]  ;;  %v1901_v14 = vmul.f32 %v3490_v9, %v3307_v20 }
  0x41   :  { %v1939_v59 = vsel %vm73_vm0, %v1905_v54, 0.0 }
  0x42   :  { %730 = vadd.xlane.f32.xlu1 %v729_v13  ;;  %v1346_v13 = vsel %vm73_vm0, %v1302_v8, 0.0  ;;  %v1907_v8 = vmul.f32 %v3490_v9, %v3297_v18 }
  0x46   :  { %709 = vadd.xlane.f32.xlu1 %v708_v16  ;;  %v1910_v16 = vmul.f32 %v3490_v9, %v3354_v39  ;;  %v1295_v39 = vmul.f32 %v3439_v34, %v3335_v32 }
  0x48   :  { %v1954_v17 = vsel %vm73_vm0, %v1910_v16, 0.0  ;;  %v1325_v33 = vsel %vm73_vm0, %v1295_v39, 0.0 }
  0x4a   :  { %712 = vadd.xlane.f32.xlu1 %v711_v22  ;;  %v1307_v22 = vsel %vm73_vm0, %v1289_v21, 0.0 }
  0x4e   :  { %733 = vadd.xlane.f32.xlu1 %v732_v27 }
  0x52   :  { %715 = vadd.xlane.f32.xlu1 %v714_v29 }
  0x56   :  { %718 = vadd.xlane.f32.xlu1 %v717_v35  ;;  %v1303_v35 = vmul.f32 %v3439_v34, %v3349_v38  ;;  %v1897_v34 = vmul.f32 %v3490_v9, %v3272_v6 }
  0x58   :  { %736 = vadd.xlane.f32.xlu0 %v735_v40  ;;  %v1349_v41 = vsel %vm73_vm0, %v1303_v35, 0.0  ;;  %v1945_v35 = vsel %vm73_vm0, %v1907_v8, 0.0 }
  0x5a   :  { %739 = vadd.xlane.f32.xlu1 %v738_v42  ;;  %v1896_v42 = vmul.f32 %v3490_v9, %v3260_v2 }
  0x5c   :  { %1305 = vadd.xlane.f32.xlu0 %v1304_v44  ;;  %v1912_v45 = vsel %vm73_vm0, %v1896_v42, 0.0  ;;  %v3591_v42 = vsel %vm73_vm0, %v1901_v14, 0.0 }
  0x5e   :  { %742 = vadd.xlane.f32.xlu1 %v741_v46  ;;  %v3535_v46 = vld [vmem:[%s4706_s0] sm:$0x3] }
  0x60   :  { %1329 = vadd.xlane.f32.xlu0 %v1328_v47 }
  0x64   :  { %1332 = vadd.xlane.f32.xlu0 %v1331_v50  ;;  %v1915_v50 = vsel %vm73_vm0, %v1897_v34, 0.0 }
  0x68   :  { %1311 = vadd.xlane.f32.xlu0 %v1310_v51 }
  0x6c   :  { %1314 = vadd.xlane.f32.xlu0 %v1313_v53  ;;  %v1936_v53 = vsel %vm73_vm0, %v1904_v48, 0.0 }
  0x6f   :  { %752 = vperm.xlu1 %3098, %v2796_v55   ;;  %v3192_v55 = vmov 5  }
  0x70   :  { %1335 = vadd.xlane.f32.xlu0 %v1334_v56  ;;  %v336_v56 = vlaneseq }
  0x72   :  { %v339_v16 = vshrl.u32 %v336_v56, 7 }
  0x74   :  { %1338 = vadd.xlane.f32.xlu0 %v1337_v58 }
  0x78   :  { %1317 = vadd.xlane.f32.xlu0 %v1316_v60  ;;  %v2830_v60 = vld [vmem:[%s4709_s3 + $0x4] ss:$0 sm:$0xff] }
  0x7c   :  { %1320 = vadd.xlane.f32.xlu0 %v1319_v62  ;;  %v3560_v62 = vand.u32 127, %v336_v56 }
  0x7e   :  { %4724 = vst [vmem:[#allocation5_spill] sm:$0xff] %v3560_v62  ;;  %v349_v21 = vadd.s32 4294967280, %v3560_v62  ;;  %v384_v39 = vadd.s32 4294967240, %v3560_v62  ;;  %v3597_v34 = vsub.s32 %v3560_v62, %v339_v16 }
  0x80   :  { %1341 = vadd.xlane.f32.xlu0 %v1340_v1  ;;  %v1918_v1 = vsel %vm73_vm0, %v1898_v61, 0.0  ;;  %v3601_v48 = vsub.s32 %v349_v21, %v339_v16 }
  0x84   :  { %1323 = vadd.xlane.f32.xlu0 %v1322_v4  ;;  %v1906_v4 = vmul.f32 %v3490_v9, %v3302_v19  ;;  %v356_v19 = vadd.s32 4294967272, %v3560_v62 }
  0x88   :  { %1347 = vadd.xlane.f32.xlu0 %v1346_v13  ;;  %v1900_v13 = vmul.f32 %v3490_v9, %v3316_v25  ;;  %v1909_v25 = vmul.f32 %v3490_v9, %v3321_v26 }
  0x8c   :  { %1922 = vadd.xlane.f32.xlu0 %v1921_v15  ;;  %v1908_v15 = vmul.f32 %v3490_v9, %v3330_v31  ;;  %v377_v31 = vadd.s32 4294967248, %v3560_v62 }
  0x8e   :  { %v3614_v61 = vsub.s32 %v377_v31, %v339_v16 }
  0x90   :  { %1955 = vadd.xlane.f32.xlu0 %v1954_v17  ;;  %v342_v17 = vadd.s32 4294967288, %v3560_v62 }
  0x93   :  { %v3504_v24 = vpop.xlane.xlu1 %229  ;;  %1308 = vadd.xlane.f32.xlu1 %v1307_v22  ;;  %v363_v22 = vadd.s32 4294967264, %v3560_v62 }
  0x94   :  { %v3506_v27 = vpop.xlane.xlu0 %205 }
  0x95   :  { %v3605_v54 = vsub.s32 %v363_v22, %v339_v16 }
  0x97   :  { %v3511_v29 = vpop.xlane.xlu1 %232  ;;  %1344 = vadd.xlane.f32.xlu1 %v1343_v28  ;;  %v370_v28 = vadd.s32 4294967256, %v3560_v62 }
  0x98   :  { %v3513_v30 = vpop.xlane.xlu0 %208 }
  0x9b   :  { %v3518_v36 = vpop.xlane.xlu1 %214  ;;  %1326 = vadd.xlane.f32.xlu1 %v1325_v33  ;;  %v1942_v33 = vsel %vm73_vm0, %v1906_v4, 0.0 }
  0x9c   :  { %v3520_v40 = vpop.xlane.xlu0 %211 }
  0x9f   :  { %v3525_v43 = vpop.xlane.xlu1 %238  ;;  %1350 = vadd.xlane.f32.xlu1 %v1349_v41  ;;  %v1924_v41 = vsel %vm73_vm0, %v1900_v13, 0.0 }
  0xa0   :  { %v3527_v44 = vpop.xlane.xlu0 %235 }
  0xa3   :  { %v3537_v47 = vpop.xlane.xlu1 %220  ;;  %1913 = vadd.xlane.f32.xlu1 %v1912_v45  ;;  %v3594_v45 = vsel %vm73_vm0, %v1908_v15, 0.0 }
  0xa4   :  { %v3539_v49 = vpop.xlane.xlu0 %217 }
  0xa6   :  { %2520 = vperm.xlu0 %3100, %v3535_v46  }
  0xa7   :  { %v3545_v51 = vpop.xlane.xlu1 %244  ;;  %1916 = vadd.xlane.f32.xlu1 %v1915_v50  ;;  %v3599_v50 = vsub.s32 %v342_v17, %v339_v16 }
  0xa8   :  { %v3547_v52 = vpop.xlane.xlu0 %241 }
  0xaa   :  { %3103 = vset.pattern.permute.xlu0 %v3192_v55 }
  0xab   :  { %2541 = vperm.xlu0 %3103, %v3535_v46   ;;  %v227_v57 = vpop.xlane.xlu1 %226  ;;  %1937 = vadd.xlane.f32.xlu1 %v1936_v53  ;;  %v3603_v53 = vsub.s32 %v356_v19, %v339_v16 }
  0xac   :  { %v224_v58 = vpop.xlane.xlu0 %223 }
  0xaf   :  { %3104 = vset.pattern.permute.xlu0 %v3188_v7  ;;  %v251_v63 = vpop.xlane.xlu1 %250  ;;  %1940 = vadd.xlane.f32.xlu1 %v1939_v59  ;;  %v3610_v59 = vsel %vm73_vm0, %v1909_v25, 0.0 }
  0xb0   :  { %1360 = vperm.xlu0 %3104, %v2830_v60   ;;  %v248_v11 = vpop.xlane.xlu0 %247  ;;  %v3612_v60 = vsub.s32 %v370_v28, %v339_v16 }
  0xb3   :  { %1919 = vadd.xlane.f32.xlu1 %v1918_v1  ;;  %v3580_v23 = vpop.xlane.xlu1 %697  ;;  %v3616_v1 = vsub.s32 %v384_v39, %v339_v16 }
  0xb4   :  { %1968 = vperm.xlu0 %3104, %v2864_v3  }
  0xb7   :  { %1943 = vadd.xlane.f32.xlu1 %v1942_v33  ;;  %v3607_v55 = vpop.xlane.xlu1 %700 }
  0xb8   :  { %v261_v56 = vpop.permute.xlu0 %260 }
  0xb9   :  { %v263_v3 = vadd.f32 %v261_v56, %v3506_v27  ;;  %v264_v4 = vadd.f32 %v261_v56, %v3513_v30  ;;  %v265_v8 = vadd.f32 %v261_v56, %v3520_v40  ;;  %v266_v13 = vadd.f32 %v261_v56, %v3518_v36 }
  0xba   :  { %v267_v14 = vadd.f32 %v261_v56, %v3539_v49  ;;  %v268_v15 = vadd.f32 %v261_v56, %v3537_v47  ;;  %v269_v17 = vadd.f32 %v261_v56, %v224_v58  ;;  %v270_v21 = vadd.f32 %v261_v56, %v227_v57 }
  0xbb   :  { %v271_v19 = vadd.f32 %v261_v56, %v3504_v24  ;;  %v272_v22 = vadd.f32 %v261_v56, %v3511_v29  ;;  %v273_v16 = vadd.f32 %v261_v56, %v3527_v44  ;;  %v274_v27 = vadd.f32 %v261_v56, %v3525_v43  ;;  %1946 = vadd.xlane.f32.xlu1 %v1945_v35  ;;  %v3628_v30 = vpop.xlane.xlu1 %721 }
  0xbc   :  { %v275_v40 = vadd.f32 %v261_v56, %v3547_v52  ;;  %v276_v36 = vadd.f32 %v261_v56, %v3545_v51  ;;  %v277_v49 = vadd.f32 %v261_v56, %v248_v11  ;;  %v278_v25 = vadd.f32 %v261_v56, %v251_v63 }
  0xbd   :  { %v279_v47 = vmax.f32 %v263_v3, 0.0  ;;  %v280_v58 = vmax.f32 %v264_v4, 0.0  ;;  %v281_v57 = vmax.f32 %v265_v8, 0.0  ;;  %v282_v28 = vmax.f32 %v266_v13, 0.0  ;;  %v3639_v13 = vld [vmem:[%s4708_s2] ss:$0 sm:$0xff] }
  0xbe   :  { %v283_v24 = vmax.f32 %v267_v14, 0.0  ;;  %v284_v31 = vmax.f32 %v268_v15, 0.0  ;;  %v285_v29 = vmax.f32 %v269_v17, 0.0  ;;  %v286_v39 = vmax.f32 %v270_v21, 0.0 }
  0xbf   :  { %v287_v44 = vmax.f32 %v271_v19, 0.0  ;;  %v288_v43 = vmax.f32 %v272_v22, 0.0  ;;  %v289_v33 = vmax.f32 %v273_v16, 0.0  ;;  %v290_v35 = vmax.f32 %v274_v27, 0.0  ;;  %1925 = vadd.xlane.f32.xlu1 %v1924_v41  ;;  %v3632_v52 = vpop.xlane.xlu1 %724 }
  0xc0   :  { %v291_v51 = vmax.f32 %v275_v40, 0.0  ;;  %v292_v11 = vmax.f32 %v276_v36, 0.0  ;;  %v1902_v63 = vmul.f32 %v3490_v9, %v3344_v37  ;;  %v293_v56 = vmax.f32 %v277_v49, 0.0 }
  0xc1   :  { %v294_v3 = vmax.f32 %v278_v25, 0.0  ;;  %v295_v4 = vpack.c.bf16 %v280_v58, %v279_v47  ;;  %v296_v8 = vpack.c.bf16 %v282_v28, %v281_v57  ;;  %v297_v14 = vpack.c.bf16 %v284_v31, %v283_v24 }
  0xc2   :  { %v298_v41 = vpack.c.bf16 %v286_v39, %v285_v29  ;;  %v299_v15 = vpack.c.bf16 %v288_v43, %v287_v44  ;;  %v300_v17 = vpack.c.bf16 %v290_v35, %v289_v33  ;;  %v301_v16 = vpack.c.bf16 %v292_v11, %v291_v51 }
  0xc3   :  { %v320_v21 = vunpack.c.l.b16 %v295_v4  ;;  %v321_v19 = vunpack.c.h.b16 %v295_v4  ;;  %v322_v22 = vunpack.c.l.b16 %v296_v8  ;;  %1928 = vadd.xlane.f32.xlu1 %v3591_v42  ;;  %v3642_v37 = vpop.xlane.xlu1 %703  ;;  %v323_v27 = vunpack.c.h.b16 %v296_v8 }
  0xc4   :  { %v57_v40 = vmul.f32 %v3639_v13, %v3260_v2  ;;  %v1903_v36 = vmul.f32 %v3490_v9, %v3335_v32  ;;  %v328_v49 = vunpack.c.l.b16 %v299_v15  ;;  %v329_v25 = vunpack.c.h.b16 %v299_v15 }
  0xc5   :  { %v330_v47 = vunpack.c.l.b16 %v300_v17  ;;  %v1930_v58 = vsel %vm73_vm0, %v1902_v63, 0.0  ;;  %v302_v57 = vpack.c.bf16 %v294_v3, %v293_v56  ;;  %v324_v28 = vunpack.c.l.b16 %v297_v14 }
  0xc6   :  { %v325_v24 = vunpack.c.h.b16 %v297_v14  ;;  %v326_v42 = vunpack.c.l.b16 %v298_v41  ;;  %v331_v31 = vunpack.c.h.b16 %v300_v17  ;;  %v341_v29 = vrot.slane %v320_v21, %v3597_v34 }
  0xc7   :  { %v346_v39 = vrot.slane %v321_v19, %v3599_v50  ;;  %v353_v44 = vrot.slane %v322_v22, %v3601_v48  ;;  %1949 = vadd.xlane.f32.xlu1 %v3594_v45  ;;  %v3653_v2 = vpop.xlane.xlu1 %706  ;;  %v327_v43 = vunpack.c.h.b16 %v298_v41  ;;  %v332_v33 = vunpack.c.l.b16 %v301_v16 }
  0xc8   :  { %v333_v35 = vunpack.c.h.b16 %v301_v16  ;;  %v360_v51 = vrot.slane %v323_v27, %v3603_v53  ;;  %v394_v63 = vrot.slane %v328_v49, %v3597_v34  ;;  %v398_v56 = vrot.slane %v329_v25, %v3599_v50 }
  0xc9   :  { %v348_v11 = vsel %vm347_vm2, %v346_v39, %v341_v29  ;;  %v403_v3 = vrot.slane %v330_v47, %v3601_v48  ;;  %v334_v4 = vunpack.c.l.b16 %v302_v57  ;;  %v335_v8 = vunpack.c.h.b16 %v302_v57 }
  0xca   :  { %v355_v14 = vsel %vm354_vm3, %v353_v44, %v348_v11  ;;  %v367_v45 = vrot.slane %v324_v28, %v3605_v54  ;;  %v374_v15 = vrot.slane %v325_v24, %v3612_v60  ;;  %v399_v17 = vsel %vm347_vm2, %v398_v56, %v394_v63 }
  0xcb   :  { %v362_v41 = vsel %vm361_vm4, %v360_v51, %v355_v14  ;;  %v408_v21 = vrot.slane %v331_v31, %v3603_v53  ;;  %1952 = vadd.xlane.f32.xlu1 %v3610_v59  ;;  %v3667_v19 = vpop.xlane.xlu1 %727  ;;  %v381_v16 = vrot.slane %v326_v42, %v3614_v61  ;;  %v404_v27 = vsel %vm354_vm3, %v403_v3, %v399_v17 }
  0xcc   :  { %v369_v22 = vsel %vm368_vm5, %v367_v45, %v362_v41  ;;  %v413_v49 = vrot.slane %v332_v33, %v3605_v54  ;;  %v388_v47 = vrot.slane %v327_v43, %v3616_v1  ;;  %v418_v28 = vrot.slane %v333_v35, %v3612_v60  ;;  %v3115_v45 = vld [vmem:[%s4710_s4 + $0x50] sm:$0xff]  }
  0xcd   :  { %v376_v25 = vsel %vm375_vm6, %v374_v15, %v369_v22  ;;  %v409_v57 = vsel %vm361_vm4, %v408_v21, %v404_v27  ;;  %v423_v31 = vrot.slane %v334_v4, %v3614_v61  ;;  %v428_v39 = vrot.slane %v335_v8, %v3616_v1  ;;  %v3114_v4 = vld [vmem:[%s4710_s4 + $0x48] sm:$0xff]   ;;  %v3116_v21 = vld [vmem:[%s4710_s4 + $0x58] sm:$0xff]  }
  0xce   :  { %v383_v59 = vsel %vm382_vm7, %v381_v16, %v376_v25  ;;  %v414_v24 = vsel %vm368_vm5, %v413_v49, %v409_v57  ;;  %v74_v33 = vsel %vm73_vm0, %v57_v40, 0.0  ;;  %v65_v35 = vmul.f32 %v3639_v13, %v3252_v0 }
  0xcf   :  { %v390_v42 = vsel %vm389_vm8, %v388_v47, %v383_v59  ;;  %v419_v29 = vsel %vm375_vm6, %v418_v28, %v414_v24  ;;  %1931 = vadd.xlane.f32.xlu1 %v1930_v58  ;;  %v3684_v43 = vpop.xlane.xlu1 %730  ;;  %v1933_v11 = vsel %vm73_vm0, %v1903_v36, 0.0  ;;  %v1911_v63 = vmul.f32 %v3490_v9, %v3349_v38  ;;  %v3113_v58 = vld [vmem:[%s4710_s4 + $0x40] sm:$0xff]  }
  0xd0   :  { %v424_v44 = vsel %vm382_vm7, %v423_v31, %v419_v29  ;;  %v98_v0 = vsel %vm73_vm0, %v65_v35, 0.0  ;;  %v66_v36 = vmul.f32 %v3639_v13, %v3267_v5  ;;  %v60_v5 = vmul.f32 %v3639_v13, %v3281_v10  ;;  %v3740_v59 = vld [vmem:[%s4708_s2 + $0x3] ss:$0 sm:$0xff] }
  0xd1   :  { %v429_v51 = vsel %vm389_vm8, %v428_v39, %v424_v44  ;;  %v1957_v9 = vsel %vm73_vm0, %v1911_v63, 0.0  ;;  %v68_v17 = vmul.f32 %v3639_v13, %v3297_v18  ;;  %v62_v16 = vmul.f32 %v3639_v13, %v3307_v20  ;;  %v3757_v39 = vld [vmem:[%s4707_s1 + $0x40] sm:$0xff] }
  0xd2   :  { %v431_v56 = vsel %vm430_vm9, %v429_v51, %v390_v42  ;;  %v101_v14 = vsel %vm73_vm0, %v66_v36, 0.0  ;;  %v83_v15 = vsel %vm73_vm0, %v60_v5, 0.0  ;;  %v70_v49 = vmul.f32 %v3639_v13, %v3321_v26 }
  0xd3   :  { %v432_v3 = vpack.c.b16 %v431_v56, %v431_v56  ;;  %75 = vadd.xlane.f32.xlu0 %v74_v33  ;;  %1934 = vadd.xlane.f32.xlu1 %v1933_v11  ;;  %v3697_v40 = vpop.xlane.xlu1 %709  ;;  %v107_v22 = vsel %vm73_vm0, %v68_v17, 0.0  ;;  %v89_v18 = vsel %vm73_vm0, %v62_v16, 0.0  ;;  %v64_v28 = vmul.f32 %v3639_v13, %v3335_v32  ;;  %v3748_v32 = vld [vmem:[%s4707_s1] sm:$0xff] }
  0xd4   :  { %v113_v57 = vsel %vm73_vm0, %v70_v49, 0.0  ;;  %v72_v26 = vmul.f32 %v3639_v13, %v3349_v38  ;;  %v984_v42 = vmul.f32 %v3748_v32, %v3740_v59  ;;  %v985_v29 = vmul.f32 %v3740_v59, %v3272_v6 }
  0xd5   :  { %2973 = vmatmul.mubr.msk.bf16.vlgmr.msra.gmra.mrb[0].mxu0 %vm457_vm10, %v432_v3  ;;  %v95_v31 = vsel %vm73_vm0, %v64_v28, 0.0  ;;  %v992_v38 = vmul.f32 %v3757_v39, %v3740_v59  ;;  %v3193_v44 = vmov 1   ;;  %v3195_v28 = vmov 4  }
  0xd6   :  { %2989 = vmatpush3.bf16.msra.mxu0 %v3113_v58  ;;  %2996 = vmatprep.mubr.msk.bf16.mxu0 %vm3191_vm1, %v4717_v12  ;;  %v119_v35 = vsel %vm73_vm0, %v72_v26, 0.0  ;;  %v1000_v6 = vsel %vm73_vm0, %v984_v42, 0.0  ;;  %v1003_v11 = vsel %vm73_vm0, %v985_v29, 0.0 }
  0xd7   :  { %99 = vadd.xlane.f32.xlu0 %v98_v0  ;;  %2990 = vmatprep.subr.bf16.mxu0 %v4717_v12  ;;  %v713_v8 = vpop.xlane.xlu1 %712  ;;  %v3768_v63 = vsel %vm73_vm0, %v992_v38, 0.0 }
  0xd8   :  { %1958 = vadd.xlane.f32.xlu1 %v1957_v9  ;;  %v3194_v9 = vmov 3  }
  0xda   :  { %2991 = vmatpush3.bf16.msra.mxu0 %v3114_v4 }
  0xdb   :  { %102 = vadd.xlane.f32.xlu0 %v101_v14  ;;  %2992 = vmatprep.subr.bf16.mxu0 %v4717_v12  ;;  %v734_v41 = vpop.xlane.xlu1 %733 }
  0xde   :  { %2993 = vmatpush3.bf16.msra.mxu0 %v3115_v45 }
  0xdf   :  { %84 = vadd.xlane.f32.xlu0 %v83_v15  ;;  %2994 = vmatprep.subr.bf16.mxu0 %v4717_v12  ;;  %v716_v10 = vpop.xlane.xlu1 %715 }
  0xe2   :  { %2995 = vmatpush3.bf16.msra.mxu0 %v3116_v21 }
  0xe3   :  { %108 = vadd.xlane.f32.xlu0 %v107_v22  ;;  %3012 = vmatprep.subr.bf16.mxu0 %v4717_v12  ;;  %v719_v27 = vpop.xlane.xlu1 %718 }
  0xe5   :  { %v737_v25 = vpop.xlane.xlu0 %736 }
  0xe7   :  { %90 = vadd.xlane.f32.xlu0 %v89_v18  ;;  %v740_v47 = vpop.xlane.xlu1 %739 }
  0xe9   :  { %2506 = vperm.xlu1 %3098, %v3535_v46   ;;  %v3735_v20 = vpop.xlane.xlu0 %1305 }
  0xeb   :  { %114 = vadd.xlane.f32.xlu0 %v113_v57  ;;  %v743_v24 = vpop.xlane.xlu1 %742 }
  0xed   :  { %3099 = vset.pattern.permute.xlu1 %v3193_v44  ;;  %v3761_v33 = vpop.xlane.xlu0 %1329 }
  0xee   :  { %2513 = vperm.xlu1 %3099, %v3535_v46  }
  0xef   :  { %96 = vadd.xlane.f32.xlu0 %v95_v31  ;;  %v753_v51 = vpop.permute.xlu1 %752  ;;  %v3795_v31 = vld [vmem:[%s4707_s1 + $0x18] sm:$0xff] }
  0xf0   :  { %v755_v58 = vadd.f32 %v753_v51, %v3580_v23  ;;  %v756_v3 = vadd.f32 %v753_v51, %v3607_v55  ;;  %v757_v0 = vadd.f32 %v753_v51, %v3642_v37  ;;  %v758_v36 = vadd.f32 %v753_v51, %v3653_v2 }
  0xf1   :  { %v3770_v56 = vpop.xlane.xlu0 %1332  ;;  %v759_v4 = vadd.f32 %v753_v51, %v3697_v40  ;;  %v760_v14 = vadd.f32 %v753_v51, %v713_v8  ;;  %v761_v5 = vadd.f32 %v753_v51, %v716_v10  ;;  %v762_v45 = vadd.f32 %v753_v51, %v719_v27 }
  0xf2   :  { %3101 = vset.pattern.permute.xlu1 %v3194_v9  ;;  %v763_v15 = vadd.f32 %v753_v51, %v3628_v30  ;;  %v764_v23 = vadd.f32 %v753_v51, %v3632_v52  ;;  %v765_v55 = vadd.f32 %v753_v51, %v3667_v19  ;;  %v771_v17 = vmax.f32 %v755_v58, 0.0 }
  0xf3   :  { %2527 = vperm.xlu1 %3101, %v3535_v46   ;;  %120 = vadd.xlane.f32.xlu0 %v119_v35  ;;  %v766_v37 = vadd.f32 %v753_v51, %v3684_v43  ;;  %v767_v2 = vadd.f32 %v753_v51, %v734_v41  ;;  %v768_v21 = vadd.f32 %v753_v51, %v737_v25  ;;  %v772_v8 = vmax.f32 %v756_v3, 0.0  ;;  %v3788_v41 = vld [vmem:[%s4707_s1 + $0x48] sm:$0xff] }
  0xf4   :  { %v769_v22 = vadd.f32 %v753_v51, %v740_v47  ;;  %v770_v40 = vadd.f32 %v753_v51, %v743_v24  ;;  %v773_v10 = vmax.f32 %v757_v0, 0.0  ;;  %v774_v27 = vmax.f32 %v758_v36, 0.0 }
  0xf5   :  { %v3782_v16 = vpop.xlane.xlu0 %1311  ;;  %v775_v18 = vmax.f32 %v759_v4, 0.0  ;;  %v776_v49 = vmax.f32 %v760_v14, 0.0  ;;  %v777_v57 = vmax.f32 %v761_v5, 0.0  ;;  %v778_v30 = vmax.f32 %v762_v45, 0.0 }
  0xf6   :  { %v779_v52 = vmax.f32 %v763_v15, 0.0  ;;  %v780_v19 = vmax.f32 %v764_v23, 0.0  ;;  %v781_v26 = vmax.f32 %v765_v55, 0.0  ;;  %v782_v43 = vmax.f32 %v766_v37, 0.0  ;;  %v3805_v23 = vld [vmem:[%s4707_s1 + $0x50] sm:$0xff] }
  0xf7   :  { %3102 = vset.pattern.permute.xlu1 %v3195_v28  ;;  %1001 = vadd.xlane.f32.xlu0 %v1000_v6  ;;  %v993_v25 = vmul.f32 %v3788_v41, %v3740_v59  ;;  %v783_v47 = vmax.f32 %v767_v2, 0.0  ;;  %v784_v24 = vmax.f32 %v768_v21, 0.0  ;;  %v987_v42 = vmul.f32 %v3795_v31, %v3740_v59  ;;  %4725 = vst [vmem:[#allocation6_spill] sm:$0xff] %v3805_v23 }
  0xf8   :  { %2534 = vperm.xlu1 %3102, %v3535_v46   ;;  %v785_v38 = vmax.f32 %v769_v22, 0.0  ;;  %v786_v44 = vmax.f32 %v770_v40, 0.0  ;;  %v787_v35 = vpack.c.bf16 %v772_v8, %v771_v17  ;;  %v788_v51 = vpack.c.bf16 %v774_v27, %v773_v10 }
  0xf9   :  { %v3799_v29 = vpop.xlane.xlu0 %1314  ;;  %v789_v6 = vpack.c.bf16 %v776_v49, %v775_v18  ;;  %v790_v58 = vpack.c.bf16 %v778_v30, %v777_v57  ;;  %v791_v3 = vpack.c.bf16 %v780_v19, %v779_v52  ;;  %v792_v0 = vpack.c.bf16 %v782_v43, %v781_v26 }
  0xfa   :  { %v812_v36 = vunpack.c.l.b16 %v787_v35  ;;  %v813_v9 = vunpack.c.h.b16 %v787_v35  ;;  %v814_v4 = vunpack.c.l.b16 %v788_v51  ;;  %v3196_v14 = vmov 6  }
  0xfb   :  { %1004 = vadd.xlane.f32.xlu0 %v1003_v11  ;;  %v1027_v5 = vsel %vm73_vm0, %v993_v25, 0.0  ;;  %v793_v45 = vpack.c.bf16 %v784_v24, %v783_v47  ;;  %v815_v15 = vunpack.c.h.b16 %v788_v51  ;;  %v994_v55 = vmul.f32 %v3805_v23, %v3740_v59 }
  0xfc   :  { %3105 = vset.pattern.permute.xlu1 %v3196_v14  ;;  %v820_v17 = vunpack.c.l.b16 %v791_v3  ;;  %v821_v37 = vunpack.c.h.b16 %v791_v3  ;;  %v822_v2 = vunpack.c.l.b16 %v792_v0  ;;  %v1009_v21 = vsel %vm73_vm0, %v987_v42, 0.0 }
  0xfd   :  { %2548 = vperm.xlu1 %3105, %v3535_v46   ;;  %v3810_v11 = vpop.xlane.xlu0 %1335  ;;  %v794_v22 = vpack.c.bf16 %v786_v44, %v785_v38  ;;  %v816_v40 = vunpack.c.l.b16 %v789_v6  ;;  %v817_v8 = vunpack.c.h.b16 %v789_v6  ;;  %v818_v10 = vunpack.c.l.b16 %v790_v58 }
  0xfe   :  { %v823_v27 = vunpack.c.h.b16 %v792_v0  ;;  %v831_v18 = vrot.slane %v812_v36, %v3597_v34  ;;  %v835_v49 = vrot.slane %v813_v9, %v3599_v50  ;;  %v840_v57 = vrot.slane %v814_v4, %v3601_v48 }
  0xff   :  { %1025 = vadd.xlane.f32.xlu0 %v3768_v63  ;;  %v819_v30 = vunpack.c.h.b16 %v790_v58  ;;  %v824_v28 = vunpack.c.l.b16 %v793_v45  ;;  %v825_v52 = vunpack.c.h.b16 %v793_v45  ;;  %v845_v19 = vrot.slane %v815_v15, %v3603_v53 }
 0x100   :  { %v4716_v26 = vmov 7   ;;  %v836_v43 = vsel %vm347_vm2, %v835_v49, %v831_v18  ;;  %v870_v25 = vrot.slane %v820_v17, %v3597_v34  ;;  %v874_v63 = vrot.slane %v821_v37, %v3599_v50  ;;  %v3854_v18 = vld [vmem:[%s4707_s1 + $0x58] sm:$0xff] }
 0x101   :  { %3106 = vset.pattern.permute.xlu1 %v4716_v26  ;;  %v879_v47 = vrot.slane %v822_v2, %v3601_v48  ;;  %v3823_v24 = vpop.xlane.xlu0 %1338  ;;  %v826_v42 = vunpack.c.l.b16 %v794_v22  ;;  %v827_v38 = vunpack.c.h.b16 %v794_v22  ;;  %v841_v44 = vsel %vm354_vm3, %v840_v57, %v836_v43 }
 0x102   :  { %2555 = vperm.xlu1 %3106, %v3535_v46   ;;  %v850_v35 = vrot.slane %v816_v40, %v3605_v54  ;;  %v846_v51 = vsel %vm361_vm4, %v845_v19, %v841_v44  ;;  %v855_v6 = vrot.slane %v817_v8, %v3612_v60  ;;  %v875_v58 = vsel %vm347_vm2, %v874_v63, %v870_v25  ;;  %v3118_v25 = vld [vmem:[%s4710_s4 + $0x88] sm:$0xff]   ;;  %v3119_v44 = vld [vmem:[%s4710_s4 + $0x90] sm:$0xff]  }
 0x103   :  { %1028 = vadd.xlane.f32.xlu0 %v1027_v5  ;;  %v884_v3 = vrot.slane %v823_v27, %v3603_v53  ;;  %v860_v36 = vrot.slane %v818_v10, %v3614_v61  ;;  %v880_v46 = vsel %vm354_vm3, %v879_v47, %v875_v58  ;;  %v889_v9 = vrot.slane %v824_v28, %v3605_v54  ;;  %v3886_v47 = vld [vmem:[%s4707_s1 + $0x28] sm:$0xff] }
 0x104   :  { %v851_v0 = vsel %vm368_vm5, %v850_v35, %v846_v51  ;;  %v865_v14 = vrot.slane %v819_v30, %v3616_v1  ;;  %v894_v45 = vrot.slane %v825_v52, %v3612_v60  ;;  %v899_v2 = vrot.slane %v826_v42, %v3614_v61  ;;  %v3869_v52 = vld [vmem:[%s4707_s1 + $0x20] sm:$0xff] }
 0x105   :  { %v856_v4 = vsel %vm375_vm6, %v855_v6, %v851_v0  ;;  %v885_v5 = vsel %vm361_vm4, %v884_v3, %v880_v46  ;;  %v3840_v15 = vpop.xlane.xlu0 %1317  ;;  %v904_v8 = vrot.slane %v827_v38, %v3616_v1  ;;  %v1030_v27 = vsel %vm73_vm0, %v994_v55, 0.0  ;;  %v3900_v51 = vld [vmem:[%s4707_s1 + $0x60] sm:$0xff]  ;;  %v3120_v3 = vld [vmem:[%s4710_s4 + $0x98] sm:$0xff]  }
 0x106   :  { %v861_v17 = vsel %vm382_vm7, %v860_v36, %v856_v4  ;;  %v890_v37 = vsel %vm368_vm5, %v889_v9, %v885_v5  ;;  %3107 = vset.pattern.permute.xlu1 %v3188_v7  ;;  %v995_v49 = vmul.f32 %v3854_v18, %v3740_v59  ;;  %v988_v19 = vmul.f32 %v3869_v52, %v3740_v59  ;;  %v3914_v36 = vld [vmem:[%s4707_s1 + $0x68] sm:$0xff] }
 0x107   :  { %v866_v22 = vsel %vm389_vm8, %v865_v14, %v861_v17  ;;  %v895_v40 = vsel %vm375_vm6, %v894_v45, %v890_v37  ;;  %1010 = vadd.xlane.f32.xlu0 %v1009_v21  ;;  %v3117_v21 = vld [vmem:[%s4710_s4 + $0x80] sm:$0xff]   ;;  %v989_v42 = vmul.f32 %v3886_v47, %v3740_v59  ;;  %v996_v6 = vmul.f32 %v3900_v51, %v3740_v59  ;;  %v3925_v14 = vld [vmem:[%s4707_s1 + $0x30] sm:$0xff]  ;;  %v3934_v17 = vld [vmem:[%s4707_s1 + $0x8] sm:$0xff] }
 0x108   :  { %v900_v10 = vsel %vm382_vm7, %v899_v2, %v895_v40  ;;  %v1033_v55 = vsel %vm73_vm0, %v995_v49, 0.0  ;;  %v1012_v63 = vsel %vm73_vm0, %v988_v19, 0.0  ;;  %v997_v46 = vmul.f32 %v3914_v36, %v3740_v59  ;;  %v3969_v19 = vld [vmem:[%s4708_s2 + $0x5] ss:$0 sm:$0xff] }
 0x109   :  { %v905_v7 = vsel %vm389_vm8, %v904_v8, %v900_v10  ;;  %v3859_v57 = vpop.xlane.xlu0 %1320  ;;  %v1015_v35 = vsel %vm73_vm0, %v989_v42, 0.0  ;;  %v1036_v0 = vsel %vm73_vm0, %v996_v6, 0.0  ;;  %v990_v5 = vmul.f32 %v3925_v14, %v3740_v59 }
 0x10a   :  { %v906_v30 = vsel %vm430_vm9, %v905_v7, %v866_v22  ;;  %v1039_v4 = vsel %vm73_vm0, %v997_v46, 0.0  ;;  %v58_v37 = vmul.f32 %v3934_v17, %v3639_v13  ;;  %v3942_v22 = vld [vmem:[%s4707_s1 + $0x38] sm:$0xff] }
 0x10b   :  { %v907_v28 = vpack.c.b16 %v906_v30, %v906_v30  ;;  %1031 = vadd.xlane.f32.xlu0 %v1030_v27  ;;  %v1018_v2 = vsel %vm73_vm0, %v990_v5, 0.0  ;;  %v991_v40 = vmul.f32 %v3942_v22, %v3740_v59  ;;  %v3950_v27 = vld [vmem:[%s4707_s1 + $0x10] sm:$0xff]  ;;  %v3958_v30 = vld [vmem:[%s4707_s1 + $0x78] sm:$0xff] }
 0x10c   :  { %v77_v10 = vsel %vm73_vm0, %v58_v37, 0.0  ;;  %4726 = vst [vmem:[#allocation7_spill] sm:$0xff] %v3950_v27  ;;  %v59_v49 = vmul.f32 %v3950_v27, %v3639_v13 }
 0x10d   :  { %2997 = vmatmul.mubr.msk.bf16.vlgmr.msra.gmra.mrb[4].mxu0 %vm457_vm10, %v907_v28  ;;  %v3874_v43 = vpop.xlane.xlu0 %1341  ;;  %v1021_v7 = vsel %vm73_vm0, %v991_v40, 0.0  ;;  %v69_v40 = vmul.f32 %v3900_v51, %v3639_v13 }
 0x10e   :  { %3013 = vmatpush3.bf16.msra.mxu0 %v3117_v21  ;;  %3020 = vmatprep.mubr.msk.bf16.mxu0 %vm3191_vm1, %v4717_v12  ;;  %v999_v21 = vmul.f32 %v3958_v30, %v3740_v59 }
 0x10f   :  { %1034 = vadd.xlane.f32.xlu0 %v1033_v55  ;;  %3014 = vmatprep.subr.bf16.mxu0 %v4717_v12 }
 0x110   :  { %v1045_v42 = vsel %vm73_vm0, %v999_v21, 0.0  ;;  %v1601_v21 = vmul.f32 %v3788_v41, %v3969_v19 }
 0x111   :  { %v3890_v38 = vpop.xlane.xlu0 %1323 }
 0x112   :  { %3015 = vmatpush3.bf16.msra.mxu0 %v3118_v25  ;;  %v80_v25 = vsel %vm73_vm0, %v59_v49, 0.0  ;;  %v1600_v49 = vmul.f32 %v3757_v39, %v3969_v19  ;;  %v1635_v26 = vsel %vm73_vm0, %v1601_v21, 0.0 }
 0x113   :  { %1013 = vadd.xlane.f32.xlu0 %v1012_v63  ;;  %3016 = vmatprep.subr.bf16.mxu0 %v4717_v12  ;;  %v67_v63 = vmul.f32 %v3805_v23, %v3639_v13 }
 0x115   :  { %v3904_v58 = vpop.xlane.xlu0 %1347 }
 0x116   :  { %3017 = vmatpush3.bf16.msra.mxu0 %v3119_v44  ;;  %v1592_v44 = vmul.f32 %v3748_v32, %v3969_v19 }
 0x117   :  { %1016 = vadd.xlane.f32.xlu0 %v1015_v35  ;;  %3018 = vmatprep.subr.bf16.mxu0 %v4717_v12 }
 0x118   :  { %v1608_v46 = vsel %vm73_vm0, %v1592_v44, 0.0  ;;  %v110_v44 = vsel %vm73_vm0, %v69_v40, 0.0 }
 0x119   :  { %v3918_v9 = vpop.xlane.xlu0 %1922 }
 0x11a   :  { %3019 = vmatpush3.bf16.msra.mxu0 %v3120_v3  ;;  %v104_v3 = vsel %vm73_vm0, %v67_v63, 0.0 }
 0x11b   :  { %1037 = vadd.xlane.f32.xlu0 %v1036_v0  ;;  %3036 = vmatprep.subr.bf16.mxu0 %v4717_v12  ;;  %v61_v0 = vmul.f32 %v3869_v52, %v3639_v13 }
 0x11d   :  { %v3929_v45 = vpop.xlane.xlu0 %1955 }
 0x11f   :  { %1040 = vadd.xlane.f32.xlu0 %v1039_v4  ;;  %v1593_v4 = vmul.f32 %v3934_v17, %v3969_v19 }
 0x120   :  { %v1309_v8 = vpop.xlane.xlu1 %1308 }
 0x123   :  { %1019 = vadd.xlane.f32.xlu0 %v1018_v2  ;;  %v86_v2 = vsel %vm73_vm0, %v61_v0, 0.0 }
 0x124   :  { %v3962_v28 = vpop.xlane.xlu1 %1344 }
 0x125   :  { %v3964_v55 = vpop.permute.xlu0 %2520 }
 0x126   :  { %4727 = vst [vmem:[#allocation8_spill] sm:$0xff] %v3964_v55  ;;  %78 = vadd.xlane.f32.xlu1 %v77_v10  ;;  %v1611_v10 = vsel %vm73_vm0, %v1593_v4, 0.0 }
 0x127   :  { %1022 = vadd.xlane.f32.xlu0 %v1021_v7  ;;  %v63_v7 = vmul.f32 %v3925_v14, %v3639_v13 }
 0x128   :  { %v1327_v35 = vpop.xlane.xlu1 %1326 }
 0x129   :  { %v92_v4 = vsel %vm73_vm0, %v63_v7, 0.0  ;;  %v986_v7 = vmul.f32 %v3950_v27, %v3740_v59 }
 0x12a   :  { %81 = vadd.xlane.f32.xlu1 %v80_v25  ;;  %v3977_v6 = vpop.permute.xlu0 %2541 }
 0x12b   :  { %4728 = vst [vmem:[#allocation9_spill] sm:$0xff] %v3977_v6  ;;  %1046 = vadd.xlane.f32.xlu0 %v1045_v42 }
 0x12c   :  { %v1351_v5 = vpop.xlane.xlu1 %1350 }
 0x12e   :  { %105 = vadd.xlane.f32.xlu1 %v104_v3 }
 0x12f   :  { %v1361_v37 = vpop.permute.xlu0 %1360  ;;  %1609 = vadd.xlane.f32.xlu0 %v1608_v46  ;;  %v1632_v46 = vsel %vm73_vm0, %v1600_v49, 0.0  ;;  %v1595_v49 = vmul.f32 %v3795_v31, %v3969_v19 }
 0x130   :  { %v3995_v25 = vpop.xlane.xlu1 %1913  ;;  %v1363_v63 = vadd.f32 %v1361_v37, %v3735_v20  ;;  %v1364_v42 = vadd.f32 %v1361_v37, %v1309_v8  ;;  %v1365_v3 = vadd.f32 %v1361_v37, %v3782_v16  ;;  %v1366_v0 = vadd.f32 %v1361_v37, %v3799_v29 }
 0x131   :  { %v1367_v16 = vadd.f32 %v1361_v37, %v3840_v15  ;;  %v1368_v29 = vadd.f32 %v1361_v37, %v3859_v57  ;;  %v1371_v40 = vadd.f32 %v1361_v37, %v3761_v33  ;;  %v1374_v15 = vadd.f32 %v1361_v37, %v3823_v24 }
 0x132   :  { %87 = vadd.xlane.f32.xlu1 %v86_v2  ;;  %v4007_v2 = vld [vmem:[%s4707_s1 + $0x70] sm:$0xff]  ;;  %v1379_v21 = vmax.f32 %v1363_v63, 0.0  ;;  %v1380_v12 = vmax.f32 %v1364_v42, 0.0  ;;  %v1381_v6 = vmax.f32 %v1365_v3, 0.0  ;;  %v1382_v57 = vmax.f32 %v1366_v0, 0.0 }
 0x133   :  { %1612 = vadd.xlane.f32.xlu0 %v1611_v10  ;;  %v71_v20 = vmul.f32 %v4007_v2, %v3639_v13  ;;  %v1372_v10 = vadd.f32 %v1361_v37, %v3770_v56  ;;  %v1373_v13 = vadd.f32 %v1361_v37, %v3810_v11  ;;  %v1602_v56 = vmul.f32 %v3805_v23, %v3969_v19 }
 0x134   :  { %v4011_v8 = vpop.xlane.xlu1 %1916  ;;  %v1370_v31 = vadd.f32 %v1361_v37, %v1327_v35  ;;  %v1383_v27 = vmax.f32 %v1367_v16, 0.0  ;;  %v1384_v63 = vmax.f32 %v1368_v29, 0.0  ;;  %v1387_v42 = vmax.f32 %v1371_v40, 0.0 }
 0x135   :  { %v116_v33 = vsel %vm73_vm0, %v71_v20, 0.0  ;;  %v1617_v11 = vsel %vm73_vm0, %v1595_v49, 0.0  ;;  %v1375_v24 = vadd.f32 %v1361_v37, %v3874_v43  ;;  %v1376_v3 = vadd.f32 %v1361_v37, %v3962_v28 }
 0x136   :  { %111 = vadd.xlane.f32.xlu1 %v110_v44  ;;  %v1369_v44 = vadd.f32 %v1361_v37, %v3890_v38  ;;  %v1395_v0 = vpack.c.bf16 %v1380_v12, %v1379_v21  ;;  %v1389_v20 = vmax.f32 %v1373_v13, 0.0  ;;  %v1390_v23 = vmax.f32 %v1374_v15, 0.0 }
 0x137   :  { %1633 = vadd.xlane.f32.xlu0 %v1632_v46  ;;  %v1388_v46 = vmax.f32 %v1372_v10, 0.0  ;;  %v1396_v62 = vpack.c.bf16 %v1382_v57, %v1381_v6  ;;  %v998_v38 = vmul.f32 %v4007_v2, %v3740_v59  ;;  %v1377_v35 = vadd.f32 %v1361_v37, %v3904_v58 }
 0x138   :  { %v4027_v55 = vpop.xlane.xlu1 %1937  ;;  %v1378_v16 = vadd.f32 %v1361_v37, %v1351_v5  ;;  %v1385_v29 = vmax.f32 %v1369_v44, 0.0  ;;  %v1386_v40 = vmax.f32 %v1370_v31, 0.0  ;;  %v1006_v10 = vsel %vm73_vm0, %v986_v7, 0.0 }
 0x139   :  { %v1397_v43 = vpack.c.bf16 %v1384_v63, %v1383_v27  ;;  %v1399_v49 = vpack.c.bf16 %v1388_v46, %v1387_v42  ;;  %v1603_v12 = vmul.f32 %v3854_v18, %v3969_v19  ;;  %v1392_v28 = vmax.f32 %v1376_v3, 0.0 }
 0x13a   :  { %93 = vadd.xlane.f32.xlu1 %v92_v4  ;;  %v1420_v6 = vunpack.c.l.b16 %v1395_v0  ;;  %v1421_v21 = vunpack.c.h.b16 %v1395_v0  ;;  %v1638_v59 = vsel %vm73_vm0, %v1602_v56, 0.0  ;;  %v1400_v58 = vpack.c.bf16 %v1390_v23, %v1389_v20 }
 0x13b   :  { %1636 = vadd.xlane.f32.xlu0 %v1635_v26  ;;  %v1391_v26 = vmax.f32 %v1375_v24, 0.0  ;;  %v1422_v5 = vunpack.c.l.b16 %v1396_v62  ;;  %v1042_v37 = vsel %vm73_vm0, %v998_v38, 0.0  ;;  %v1393_v13 = vmax.f32 %v1377_v35, 0.0 }
 0x13c   :  { %v4035_v4 = vpop.xlane.xlu1 %1940  ;;  %v1394_v15 = vmax.f32 %v1378_v16, 0.0  ;;  %v1398_v7 = vpack.c.bf16 %v1386_v40, %v1385_v29  ;;  %v1423_v27 = vunpack.c.h.b16 %v1396_v62  ;;  %v1424_v44 = vunpack.c.l.b16 %v1397_v43 }
 0x13d   :  { %v1428_v31 = vunpack.c.l.b16 %v1399_v49  ;;  %v1596_v63 = vmul.f32 %v3869_v52, %v3969_v19  ;;  %v1401_v42 = vpack.c.bf16 %v1392_v28, %v1391_v26  ;;  %v1425_v56 = vunpack.c.h.b16 %v1397_v43 }
 0x13e   :  { %117 = vadd.xlane.f32.xlu1 %v116_v33  ;;  %v1641_v33 = vsel %vm73_vm0, %v1603_v12, 0.0  ;;  %v1439_v23 = vrot.slane %v1420_v6, %v3597_v34  ;;  %v1443_v46 = vrot.slane %v1421_v21, %v3599_v50  ;;  %v1430_v24 = vunpack.c.l.b16 %v1400_v58 }
 0x13f   :  { %1618 = vadd.xlane.f32.xlu0 %v1617_v11  ;;  %v1429_v11 = vunpack.c.h.b16 %v1399_v49  ;;  %v1448_v62 = vrot.slane %v1422_v5, %v3601_v48  ;;  %v1597_v3 = vmul.f32 %v3886_v47, %v3969_v19  ;;  %v1402_v0 = vpack.c.bf16 %v1394_v15, %v1393_v13 }
 0x140   :  { %v4042_v57 = vpop.xlane.xlu1 %1919  ;;  %v1426_v20 = vunpack.c.l.b16 %v1398_v7  ;;  %v1444_v38 = vsel %vm347_vm2, %v1443_v46, %v1439_v23  ;;  %v1453_v35 = vrot.slane %v1423_v27, %v3603_v53  ;;  %v1431_v16 = vunpack.c.h.b16 %v1400_v58 }
 0x141   :  { %v1449_v29 = vsel %vm354_vm3, %v1448_v62, %v1444_v38  ;;  %v1458_v40 = vrot.slane %v1424_v44, %v3605_v54  ;;  %v1427_v49 = vunpack.c.h.b16 %v1398_v7  ;;  %v1432_v12 = vunpack.c.l.b16 %v1401_v42 }
 0x142   :  { %1007 = vadd.xlane.f32.xlu1 %v1006_v10  ;;  %v1478_v10 = vrot.slane %v1428_v31, %v3597_v34  ;;  %v1454_v26 = vsel %vm361_vm4, %v1453_v35, %v1449_v29  ;;  %v1463_v28 = vrot.slane %v1425_v56, %v3612_v60  ;;  %v1433_v6 = vunpack.c.h.b16 %v1401_v42 }
 0x143   :  { %1639 = vadd.xlane.f32.xlu0 %v1638_v59  ;;  %v1459_v21 = vsel %vm368_vm5, %v1458_v40, %v1454_v26  ;;  %v1482_v59 = vrot.slane %v1429_v11, %v3599_v50  ;;  %v1487_v58 = vrot.slane %v1430_v24, %v3601_v48  ;;  %v1434_v5 = vunpack.c.l.b16 %v1402_v0  ;;  %v3121_v26 = vld [vmem:[%s4710_s4 + $0xc0] sm:$0xff]  }
 0x144   :  { %v4057_v43 = vpop.xlane.xlu1 %1943  ;;  %v1464_v13 = vsel %vm375_vm6, %v1463_v28, %v1459_v21  ;;  %v1468_v15 = vrot.slane %v1426_v20, %v3614_v61  ;;  %v1620_v7 = vsel %vm73_vm0, %v1596_v63, 0.0  ;;  %v1435_v27 = vunpack.c.h.b16 %v1402_v0 }
 0x145   :  { %v1483_v44 = vsel %vm347_vm2, %v1482_v59, %v1478_v10  ;;  %v1497_v23 = vrot.slane %v1432_v12, %v3605_v54  ;;  %v1502_v11 = vrot.slane %v1433_v6, %v3612_v60  ;;  %v1507_v24 = vrot.slane %v1434_v5, %v3614_v61  ;;  %v4085_v10 = vpop.permute.xlu0 %1968 }
 0x146   :  { %1043 = vadd.xlane.f32.xlu1 %v1042_v37  ;;  %v1492_v37 = vrot.slane %v1431_v16, %v3603_v53  ;;  %v1469_v42 = vsel %vm382_vm7, %v1468_v15, %v1464_v13  ;;  %v1488_v56 = vsel %vm354_vm3, %v1487_v58, %v1483_v44  ;;  %v1623_v62 = vsel %vm73_vm0, %v1597_v3, 0.0 }
 0x147   :  { %1642 = vadd.xlane.f32.xlu0 %v1641_v33  ;;  %v1473_v33 = vrot.slane %v1427_v49, %v3616_v1  ;;  %v1604_v0 = vmul.f32 %v3900_v51, %v3969_v19  ;;  %v1512_v35 = vrot.slane %v1435_v27, %v3616_v1  ;;  %v1605_v12 = vmul.f32 %v3914_v36, %v3969_v19 }
 0x148   :  { %v1947_v31 = vpop.xlane.xlu1 %1946  ;;  %v1493_v46 = vsel %vm361_vm4, %v1492_v37, %v1488_v56  ;;  %v1972_v28 = vadd.f32 %v4085_v10, %v4011_v8  ;;  %v1973_v6 = vadd.f32 %v4085_v10, %v4042_v57  ;;  %v1971_v58 = vadd.f32 %v4085_v10, %v3995_v25  ;;  %v2770_v8 = vld [vmem:[%s4709_s3] ss:$0 sm:$0xff] }
 0x149   :  { %v1498_v63 = vsel %vm368_vm5, %v1497_v23, %v1493_v46  ;;  %v1474_v20 = vsel %vm389_vm8, %v1473_v33, %v1469_v42  ;;  %v1644_v3 = vsel %vm73_vm0, %v1604_v0, 0.0  ;;  %v1980_v5 = vadd.f32 %v4085_v10, %v4035_v4  ;;  %v3122_v4 = vld [vmem:[%s4710_s4 + $0xc8] sm:$0xff]  }
 0x14a   :  { %v1503_v38 = vsel %vm375_vm6, %v1502_v11, %v1498_v63  ;;  %v1974_v13 = vadd.f32 %v4085_v10, %v3918_v9  ;;  %v1982_v15 = vadd.f32 %v4085_v10, %v1947_v31  ;;  %v1647_v57 = vsel %vm73_vm0, %v1605_v12, 0.0  ;;  %v4141_v12 = vld [vmem:[%s4708_s2 + $0x7] ss:$0 sm:$0xff]  ;;  %s3198_s2 = smov [#allocation2]  }
 0x14b   :  { %1621 = vadd.xlane.f32.xlu0 %v1620_v7  ;;  %v1508_v29 = vsel %vm382_vm7, %v1507_v24, %v1503_v38  ;;  %v1598_v25 = vmul.f32 %v3925_v14, %v3969_v19  ;;  %v4729_v9 = vmov 0.0   ;;  %v1988_v7 = vmax.f32 %v1972_v28, 0.0  ;;  %s2761_s26 = sshll.u32 %s3198_s2, 4  ;;  %s2762_s26 = int_to_ptr.vmem [resolvable:$true] %s2761_s26 }
 0x14c   :  { %v1926_v16 = vpop.xlane.xlu1 %1925  ;;  %v1513_v40 = vsel %vm389_vm8, %v1512_v35, %v1508_v29  ;;  %v1979_v27 = vadd.f32 %v4085_v10, %v4027_v55  ;;  %v1989_v44 = vmax.f32 %v1973_v6, 0.0  ;;  %v1981_v31 = vadd.f32 %v4085_v10, %v4057_v43  ;;  %v2813_v55 = vld [vmem:[%s4709_s3 + $0x3] ss:$0 sm:$0xff]  ;;  %v3123_v43 = vld [vmem:[%s4710_s4 + $0xd0] sm:$0xff]   ;;  %p3169_p1 = scmp.lt.s32.totalorder %s2762_s26, %s2762_s26 }
 0x14d   :  { %v1514_v49 = vsel %vm430_vm9, %v1513_v40, %v1474_v20  ;;  %v1987_v56 = vmax.f32 %v1971_v58, 0.0  ;;  %v1996_v23 = vmax.f32 %v1980_v5, 0.0  ;;  %v1990_v33 = vmax.f32 %v1974_v13, 0.0 }
 0x14e   :  { %v1515_v21 = vpack.c.b16 %v1514_v49, %v1514_v49  ;;  %v1998_v46 = vmax.f32 %v1982_v15, 0.0  ;;  %v1975_v11 = vadd.f32 %v4085_v10, %v1926_v16  ;;  %v1626_v63 = vsel %vm73_vm0, %v1598_v25, 0.0 }
 0x14f   :  { %1624 = vadd.xlane.f32.xlu0 %v1623_v62  ;;  %v1599_v24 = vmul.f32 %v3942_v22, %v3969_v19  ;;  %v2003_v62 = vpack.c.bf16 %v1988_v7, %v1987_v56  ;;  %v1995_v0 = vmax.f32 %v1979_v27, 0.0  ;;  %v2004_v20 = vpack.c.bf16 %v1990_v33, %v1989_v44 }
 0x150   :  { %v1929_v59 = vpop.xlane.xlu1 %1928  ;;  %3021 = vmatmul.mubr.msk.bf16.vlgmr.msra.gmra.mrb[8].mxu0 %vm457_vm10, %v1515_v21  ;;  %v1997_v35 = vmax.f32 %v1981_v31, 0.0  ;;  %v1991_v28 = vmax.f32 %v1975_v11, 0.0  ;;  %v2200_v25 = vmul.f32 %v3748_v32, %v4141_v12  ;;  %v2201_v56 = vmul.f32 %v3934_v17, %v4141_v12 }
 0x151   :  { %3037 = vmatpush3.bf16.msra.mxu0 %v3121_v26  ;;  %3044 = vmatprep.mubr.msk.bf16.mxu0 %vm3191_vm1, %v4729_v9  ;;  %v1976_v42 = vadd.f32 %v4085_v10, %v1929_v59  ;;  %v2007_v49 = vpack.c.bf16 %v1996_v23, %v1995_v0  ;;  %v1629_v21 = vsel %vm73_vm0, %v1599_v24, 0.0  ;;  %v3124_v59 = vld [vmem:[%s4710_s4 + $0xd8] sm:$0xff]   ;;  %v2028_v58 = vunpack.c.l.b16 %v2003_v62 }
 0x152   :  { %3038 = vmatprep.subr.bf16.mxu0 %v4729_v9  ;;  %v2008_v26 = vpack.c.bf16 %v1998_v46, %v1997_v35  ;;  %v2029_v5 = vunpack.c.h.b16 %v2003_v62  ;;  %v2030_v15 = vunpack.c.l.b16 %v2004_v20  ;;  %v2031_v32 = vunpack.c.h.b16 %v2004_v20 }
 0x153   :  { %1645 = vadd.xlane.f32.xlu0 %v1644_v3  ;;  %v1992_v16 = vmax.f32 %v1976_v42, 0.0  ;;  %v1607_v3 = vmul.f32 %v3958_v30, %v3969_v19  ;;  %v2037_v7 = vunpack.c.h.b16 %v2007_v49  ;;  %v2047_v23 = vrot.slane %v2028_v58, %v3597_v34 }
 0x154   :  { %v1950_v37 = vpop.xlane.xlu1 %1949  ;;  %v2038_v44 = vunpack.c.l.b16 %v2008_v26  ;;  %v2051_v33 = vrot.slane %v2029_v5, %v3599_v50  ;;  %v2208_v11 = vmul.f32 %v3757_v39, %v4141_v12  ;;  %v2039_v0 = vunpack.c.h.b16 %v2008_v26  ;;  %v3129_v39 = vld [vmem:[%s4710_s4] sm:$0xff]  }
 0x155   :  { %3039 = vmatpush3.bf16.msra.mxu0 %v3122_v4  ;;  %v1983_v29 = vadd.f32 %v4085_v10, %v1950_v37  ;;  %v2036_v4 = vunpack.c.l.b16 %v2007_v49  ;;  %v1653_v27 = vsel %vm73_vm0, %v1607_v3, 0.0  ;;  %v2090_v62 = vrot.slane %v2037_v7, %v3599_v50  ;;  %2977 = vmatpush3.bf16.msra.mxu1 %v3129_v39 }
 0x156   :  { %3040 = vmatprep.subr.bf16.mxu0 %v4729_v9  ;;  %v1985_v20 = vadd.f32 %v4085_v10, %v3929_v45  ;;  %v2052_v49 = vsel %vm347_vm2, %v2051_v33, %v2047_v23  ;;  %v2061_v3 = vrot.slane %v2031_v32, %v3603_v53  ;;  %v3130_v45 = vld [vmem:[%s4710_s4 + $0x8] sm:$0xff]   ;;  %2978 = vmatprep.subr.bf16.mxu1 %v4729_v9 }
 0x157   :  { %129 = vperm.xlu1 %3107, %v2770_v8   ;;  %1648 = vadd.xlane.f32.xlu0 %v1647_v57  ;;  %v2005_v8 = vpack.c.bf16 %v1992_v16, %v1991_v28  ;;  %v1999_v57 = vmax.f32 %v1983_v29, 0.0  ;;  %v2086_v17 = vrot.slane %v2036_v4, %v3597_v34 }
 0x158   :  { %v1953_v38 = vpop.xlane.xlu1 %1952 }
 0x159   :  { %v1984_v40 = vadd.f32 %v4085_v10, %v1953_v38  ;;  %3041 = vmatpush3.bf16.msra.mxu0 %v3123_v43  ;;  %v2216_v43 = vsel %vm73_vm0, %v2200_v25, 0.0  ;;  %v2095_v38 = vrot.slane %v2038_v44, %v3601_v48  ;;  %v2033_v26 = vunpack.c.h.b16 %v2005_v8  ;;  %2979 = vmatpush3.bf16.msra.mxu1 %v3130_v45  ;;  %v4731_v45 = vld [vmem:[#allocation8_spill] sm:$0xff] }
 0x15a   :  { %3042 = vmatprep.subr.bf16.mxu0 %v4729_v9  ;;  %2980 = vmatprep.subr.bf16.mxu1 %v4729_v9 }
 0x15b   :  { %1056 = vperm.xlu1 %3107, %v2813_v55   ;;  %1627 = vadd.xlane.f32.xlu0 %v1626_v63  ;;  %v2000_v6 = vmax.f32 %v1984_v40, 0.0  ;;  %v2056_v55 = vrot.slane %v2030_v15, %v3601_v48  ;;  %v2032_v63 = vunpack.c.l.b16 %v2005_v8  ;;  %v2100_v15 = vrot.slane %v2039_v0, %v3603_v53 }
 0x15c   :  { %v1932_v13 = vpop.xlane.xlu1 %1931 }
 0x15d   :  { %v2009_v37 = vpack.c.bf16 %v2000_v6, %v1999_v57  ;;  %v1977_v31 = vadd.f32 %v4085_v10, %v1932_v13  ;;  %3043 = vmatpush3.bf16.msra.mxu0 %v3124_v59  ;;  %v2219_v6 = vsel %vm73_vm0, %v2201_v56, 0.0  ;;  %v2066_v59 = vrot.slane %v2032_v63, %v3605_v54 }
 0x15e   :  { %3060 = vmatprep.subr.bf16.mxu0 %v4729_v9  ;;  %v2091_v13 = vsel %vm347_vm2, %v2090_v62, %v2086_v17  ;;  %v2001_v57 = vmax.f32 %v1985_v20, 0.0  ;;  %v4730_v20 = vld [vmem:[#allocation5_spill] sm:$0xff] }
 0x15f   :  { %1630 = vadd.xlane.f32.xlu0 %v1629_v21  ;;  %v2040_v35 = vunpack.c.l.b16 %v2009_v37  ;;  %v1993_v16 = vmax.f32 %v1977_v31, 0.0  ;;  %v2057_v21 = vsel %vm354_vm3, %v2056_v55, %v2052_v49  ;;  %v2041_v8 = vunpack.c.h.b16 %v2009_v37  ;;  %v3131_v37 = vld [vmem:[%s4710_s4 + $0x10] sm:$0xff]  }
 0x160   :  { %v4152_v42 = vpop.xlane.xlu0 %75  ;;  %v1935_v46 = vpop.xlane.xlu1 %1934  ;;  %v2096_v25 = vsel %vm354_vm3, %v2095_v38, %v2091_v13  ;;  %v2062_v31 = vsel %vm361_vm4, %v2061_v3, %v2057_v21  ;;  %2981 = vmatpush3.bf16.msra.mxu1 %v3131_v37  ;;  %vm2522_vm13 = vcmp.eq.s32.totalorder %v4730_v20, %v4731_v45 }
 0x161   :  { %v1978_v24 = vadd.f32 %v4085_v10, %v1935_v46  ;;  %v2105_v4 = vrot.slane %v2040_v35, %v3605_v54  ;;  %v2067_v33 = vsel %vm368_vm5, %v2066_v59, %v2062_v31  ;;  %v2101_v55 = vsel %vm361_vm4, %v2100_v15, %v2096_v25  ;;  %2982 = vmatprep.subr.bf16.mxu1 %v4729_v9 }
 0x162   :  { %v2110_v63 = vrot.slane %v2041_v8, %v3612_v60 }
 0x163   :  { %1654 = vadd.xlane.f32.xlu0 %v1653_v27  ;;  %v1994_v29 = vmax.f32 %v1978_v24, 0.0  ;;  %v2240_v24 = vsel %vm73_vm0, %v2208_v11, 0.0  ;;  %v2106_v17 = vsel %vm368_vm5, %v2105_v4, %v2101_v55  ;;  %v3132_v11 = vld [vmem:[%s4710_s4 + $0x18] sm:$0xff]   ;;  %v3125_v4 = vld [vmem:[%s4712_s6] sm:$0xff]  }
 0x164   :  { %v4172_v40 = vpop.xlane.xlu0 %99  ;;  %v2111_v3 = vsel %vm375_vm6, %v2110_v63, %v2106_v17  ;;  %2983 = vmatpush3.bf16.msra.mxu1 %v3132_v11  ;;  %v2211_v17 = vmul.f32 %v3854_v18, %v4141_v12 }
 0x165   :  { %v1959_v28 = vpop.xlane.xlu1 %1958  ;;  %v2006_v58 = vpack.c.bf16 %v1994_v29, %v1993_v16  ;;  %3000 = vmatprep.subr.bf16.mxu1 %v4729_v9 }
 0x166   :  { %v1986_v5 = vadd.f32 %v4085_v10, %v1959_v28  ;;  %v2071_v10 = vrot.slane %v2033_v26, %v3612_v60 }
 0x167   :  { %2217 = vadd.xlane.f32.xlu0 %v2216_v43  ;;  %v2034_v7 = vunpack.c.l.b16 %v2006_v58  ;;  %v2035_v56 = vunpack.c.h.b16 %v2006_v58  ;;  %v2209_v43 = vmul.f32 %v3788_v41, %v4141_v12 }
 0x168   :  { %v2002_v27 = vmax.f32 %v1986_v5, 0.0  ;;  %v4188_v44 = vpop.xlane.xlu0 %102  ;;  %v2072_v38 = vsel %vm375_vm6, %v2071_v10, %v2067_v33  ;;  %v4732_v5 = vld [vmem:[#allocation7_spill] sm:$0xff] }
 0x169   :  { %v2507_v23 = vpop.permute.xlu1 %2506  ;;  %v2076_v32 = vrot.slane %v2034_v7, %v3614_v61  ;;  %v2081_v35 = vrot.slane %v2035_v56, %v3616_v1  ;;  %v2202_v13 = vmul.f32 %v4732_v5, %v4141_v12  ;;  %v2898_v7 = vsel %vm2522_vm13, 1.0, %v4729_v9 }
 0x16a   :  { %v2010_v46 = vpack.c.bf16 %v2002_v27, %v2001_v57  ;;  %vm2508_vm11 = vcmp.eq.s32.totalorder %v4730_v20, %v2507_v23  ;;  %v4733_v23 = vld [vmem:[#allocation6_spill] sm:$0xff]  ;;  %v1594_v55 = vmul.f32 %v4732_v5, %v3969_v19 }
 0x16b   :  { %2220 = vadd.xlane.f32.xlu0 %v2219_v6  ;;  %v2077_v41 = vsel %vm382_vm7, %v2076_v32, %v2072_v38  ;;  %v2896_v26 = vsel %vm2508_vm11, 1.0, %v4729_v9  ;;  %v2243_v6 = vsel %vm73_vm0, %v2209_v43, 0.0  ;;  %v2222_v10 = vsel %vm73_vm0, %v2202_v13, 0.0  ;;  %v3126_v32 = vld [vmem:[%s4712_s6 + $0x8] sm:$0xff]  }
 0x16c   :  { %v2042_v62 = vunpack.c.l.b16 %v2010_v46  ;;  %v2043_v0 = vunpack.c.h.b16 %v2010_v46  ;;  %v4205_v39 = vpop.xlane.xlu0 %84  ;;  %v2082_v15 = vsel %vm389_vm8, %v2081_v35, %v2077_v41  ;;  %v2210_v37 = vmul.f32 %v4733_v23, %v4141_v12  ;;  %v3127_v35 = vld [vmem:[%s4712_s6 + $0x10] sm:$0xff]  }
 0x16d   :  { %v2514_v16 = vpop.permute.xlu1 %2513  ;;  %v1614_v11 = vsel %vm73_vm0, %v1594_v55, 0.0  ;;  %v2249_v41 = vsel %vm73_vm0, %v2211_v17, 0.0 }
 0x16e   :  { %v2115_v29 = vrot.slane %v2042_v62, %v3614_v61  ;;  %v2120_v49 = vrot.slane %v2043_v0, %v3616_v1  ;;  %vm2515_vm12 = vcmp.eq.s32.totalorder %v4730_v20, %v2514_v16  ;;  %v4734_v0 = vld [vmem:[#allocation9_spill] sm:$0xff] }
 0x16f   :  { %v2897_v28 = vsel %vm2515_vm12, 1.0, %v4729_v9  ;;  %2241 = vadd.xlane.f32.xlu0 %v2240_v24  ;;  %v2246_v24 = vsel %vm73_vm0, %v2210_v37, 0.0  ;;  %vm2543_vm11 = vcmp.eq.s32.totalorder %v4730_v20, %v4734_v0  ;;  %v2207_v37 = vmul.f32 %v3942_v22, %v4141_v12 }
 0x170   :  { %v2116_v21 = vsel %vm382_vm7, %v2115_v29, %v2111_v3  ;;  %v2518_v59 = vadd.f32 %v2897_v28, %v2896_v26  ;;  %v4224_v58 = vpop.xlane.xlu0 %108  ;;  %v1606_v29 = vmul.f32 %v4007_v2, %v3969_v19  ;;  %v2901_v3 = vsel %vm2543_vm11, 1.0, %v4729_v9  ;;  %v3128_v28 = vld [vmem:[%s4712_s6 + $0x18] sm:$0xff]  }
 0x171   :  { %v2121_v8 = vsel %vm389_vm8, %v2120_v49, %v2116_v21  ;;  %v2204_v49 = vmul.f32 %v3869_v52, %v4141_v12  ;;  %v2205_v21 = vmul.f32 %v3886_v47, %v4141_v12 }
 0x172   :  { %v2528_v57 = vpop.permute.xlu1 %2527  ;;  %v2122_v25 = vsel %vm430_vm9, %v2121_v8, %v2082_v15  ;;  %v2525_v31 = vadd.f32 %v2898_v7, %v2518_v59  ;;  %v1650_v45 = vsel %vm73_vm0, %v1606_v29, 0.0  ;;  %v2213_v7 = vmul.f32 %v3914_v36, %v4141_v12  ;;  %v2847_v36 = vld [vmem:[%s4709_s3 + $0x5] ss:$0 sm:$0xff] }
 0x173   :  { %vm2529_vm14 = vcmp.eq.s32.totalorder %v4730_v20, %v2528_v57  ;;  %2244 = vadd.xlane.f32.xlu0 %v2243_v6  ;;  %v2123_v27 = vpack.c.b16 %v2122_v25, %v2122_v25  ;;  %v2228_v19 = vsel %vm73_vm0, %v2204_v49, 0.0  ;;  %v2231_v8 = vsel %vm73_vm0, %v2205_v21, 0.0 }
 0x174   :  { %v4238_v56 = vpop.xlane.xlu0 %90  ;;  %v2899_v33 = vsel %vm2529_vm14, 1.0, %v4729_v9  ;;  %v2212_v25 = vmul.f32 %v3900_v51, %v4141_v12 }
 0x175   :  { %3045 = vmatmul.mubr.msk.bf16.vlgmr.msra.gmra.mrb[12].mxu0 %vm457_vm10, %v2123_v27  ;;  %v2532_v63 = vadd.f32 %v2899_v33, %v2525_v31  ;;  %v2255_v27 = vsel %vm73_vm0, %v2213_v7, 0.0  ;;  %v2237_v33 = vsel %vm73_vm0, %v2207_v37, 0.0 }
 0x176   :  { %3061 = vmatpush3.bf16.msra.mxu0 %v3125_v4  ;;  %3068 = vmatprep.mubr.msk.bf16.mxu0 %vm3191_vm1, %v4729_v9  ;;  %v2252_v47 = vsel %vm73_vm0, %v2212_v25, 0.0 }
 0x177   :  { %v2535_v46 = vpop.permute.xlu1 %2534  ;;  %2223 = vadd.xlane.f32.xlu0 %v2222_v10  ;;  %3062 = vmatprep.subr.bf16.mxu0 %v4729_v9  ;;  %v2206_v10 = vmul.f32 %v3925_v14, %v4141_v12  ;;  %v2214_v14 = vmul.f32 %v4007_v2, %v4141_v12 }
 0x178   :  { %vm2536_vm15 = vcmp.eq.s32.totalorder %v4730_v20, %v2535_v46  ;;  %v4254_v43 = vpop.xlane.xlu0 %114 }
 0x179   :  { %v2900_v62 = vsel %vm2536_vm15, 1.0, %v4729_v9  ;;  %v2234_v51 = vsel %vm73_vm0, %v2206_v10, 0.0  ;;  %v2258_v46 = vsel %vm73_vm0, %v2214_v14, 0.0 }
 0x17a   :  { %v2539_v38 = vadd.f32 %v2900_v62, %v2532_v63  ;;  %3063 = vmatpush3.bf16.msra.mxu0 %v3126_v32 }
 0x17b   :  { %2247 = vadd.xlane.f32.xlu0 %v2246_v24  ;;  %3064 = vmatprep.subr.bf16.mxu0 %v4729_v9 }
 0x17c   :  { %v2549_v16 = vpop.permute.xlu1 %2548  ;;  %v4267_v18 = vpop.xlane.xlu0 %96  ;;  %v2546_v26 = vadd.f32 %v2901_v3, %v2539_v38 }
 0x17d   :  { %vm2550_vm12 = vcmp.eq.s32.totalorder %v4730_v20, %v2549_v16  ;;  %v2881_v16 = vld [vmem:[%s4709_s3 + $0x7] ss:$0 sm:$0xff] }
 0x17e   :  { %3065 = vmatpush3.bf16.msra.mxu0 %v3127_v35  ;;  %v2902_v6 = vsel %vm2550_vm12, 1.0, %v4729_v9 }
 0x17f   :  { %1615 = vadd.xlane.f32.xlu1 %v1614_v11  ;;  %2250 = vadd.xlane.f32.xlu0 %v2249_v41  ;;  %v2553_v5 = vadd.f32 %v2902_v6, %v2546_v26  ;;  %v3163_v41 = vld [vmem:[%s4707_s1 + $0x18] sm:$0xff]  ;;  %v4736_v6 = vmov 7  }
 0x180   :  { %3066 = vmatprep.subr.bf16.mxu0 %v4729_v9  ;;  %v4282_v52 = vpop.xlane.xlu0 %120  ;;  %v2203_v29 = vmul.f32 %v3163_v41, %v4141_v12 }
 0x181   :  { %v2556_v59 = vpop.permute.xlu1 %2555 }
 0x182   :  { %vm2557_vm13 = vcmp.eq.s32.totalorder %v4730_v20, %v2556_v59  ;;  %3067 = vmatpush3.bf16.msra.mxu0 %v3128_v28  ;;  %v2225_v26 = vsel %vm73_vm0, %v2203_v29, 0.0  ;;  %v2215_v28 = vmul.f32 %v3958_v30, %v4141_v12 }
 0x183   :  { %v2903_v13 = vsel %vm2557_vm13, 1.0, %v4729_v9  ;;  %1651 = vadd.xlane.f32.xlu1 %v1650_v45  ;;  %2229 = vadd.xlane.f32.xlu0 %v2228_v19 }
 0x184   :  { %v2560_v15 = vadd.f32 %v2903_v13, %v2553_v5  ;;  %v4289_v57 = vpop.xlane.xlu0 %1001  ;;  %v2261_v21 = vsel %vm73_vm0, %v2215_v28, 0.0  ;;  %vm2661_vm0 = vcmask 261120  }
 0x186   :  { %v2561_v4 = vpack.c.bf16 %v2560_v15, %v2560_v15 }
 0x187   :  { %2232 = vadd.xlane.f32.xlu0 %v2231_v8 }
 0x188   :  { %3069 = vmatmul.mubr.msk.bf16.vlgmr.msra.gmra.mrb[16].mxu0 %vm457_vm10, %v2561_v4  ;;  %v4295_v20 = vpop.xlane.xlu0 %1004 }
 0x18b   :  { %2253 = vadd.xlane.f32.xlu0 %v2252_v47 }
 0x18c   :  { %v4300_v31 = vpop.xlane.xlu0 %1025 }
 0x18f   :  { %2256 = vadd.xlane.f32.xlu0 %v2255_v27 }
 0x190   :  { %v4305_v23 = vpop.xlane.xlu0 %1028 }
 0x193   :  { %2235 = vadd.xlane.f32.xlu0 %v2234_v51 }
 0x194   :  { %1664 = vperm.xlu1 %3107, %v2847_v36   ;;  %v4313_v32 = vpop.xlane.xlu0 %1010 }
 0x197   :  { %2238 = vadd.xlane.f32.xlu0 %v2237_v33 }
 0x198   :  { %v4318_v55 = vpop.xlane.xlu0 %1031 }
 0x19b   :  { %2259 = vadd.xlane.f32.xlu0 %v2258_v46 }
 0x19c   :  { %v4320_v22 = vpop.xlane.xlu0 %1034 }
 0x1a0   :  { %v4322_v63 = vpop.xlane.xlu0 %1013 }
 0x1a4   :  { %v4324_v24 = vpop.xlane.xlu0 %1016 }
 0x1a8   :  { %v4326_v17 = vpop.f32.mrb[0].mxu0  ;;  %v4328_v62 = vpop.xlane.xlu0 %1037 }
 0x1a9   :  { %4735 = vst [vmem:[#allocation5_spill] sm:$0xff] %v4326_v17  ;;  %v2974_v0 = vpop.f32.mrb[1].mxu0 }
 0x1aa   :  { %v498_v38 = vpop.f32.mrb[2].mxu0 }
 0x1ab   :  { %v2975_v35 = vpop.f32.mrb[3].mxu0 }
 0x1ac   :  { %v4330_v2 = vpop.xlane.xlu0 %1040 }
 0x1b0   :  { %v4335_v11 = vpop.xlane.xlu0 %1019 }
 0x1b1   :  { %2272 = vperm.xlu0 %3104, %v2881_v16  }
 0x1b3   :  { %v79_v49 = vpop.xlane.xlu1 %78 }
 0x1b4   :  { %v4341_v3 = vpop.xlane.xlu0 %1022 }
 0x1b5   :  { %3108 = vset.pattern.permute.xlu0 %v4736_v6 }
 0x1b7   :  { %v82_v45 = vpop.xlane.xlu1 %81 }
 0x1b8   :  { %2226 = vadd.xlane.f32.xlu1 %v2225_v26  ;;  %v4347_v19 = vpop.xlane.xlu0 %1046 }
 0x1bb   :  { %v106_v59 = vpop.xlane.xlu1 %105 }
 0x1bc   :  { %2262 = vadd.xlane.f32.xlu1 %v2261_v21  ;;  %v4350_v5 = vpop.xlane.xlu0 %1609 }
 0x1bf   :  { %v88_v13 = vpop.xlane.xlu1 %87 }
 0x1c0   :  { %v4352_v15 = vpop.xlane.xlu0 %1612 }
 0x1c3   :  { %v112_v8 = vpop.xlane.xlu1 %111 }
 0x1c4   :  { %v4354_v25 = vpop.xlane.xlu0 %1633 }
 0x1c5   :  { %4737 = vst [vmem:[#allocation8_spill] sm:$0xff] %v4354_v25 }
 0x1c7   :  { %v94_v4 = vpop.xlane.xlu1 %93 }
 0x1c8   :  { %v4356_v30 = vpop.xlane.xlu0 %1636 }
 0x1c9   :  { %4738 = vst [vmem:[#allocation7_spill] sm:$0xff] %v4356_v30 }
 0x1cb   :  { %v118_v12 = vpop.xlane.xlu1 %117 }
 0x1cc   :  { %v4358_v47 = vpop.xlane.xlu0 %1618 }
 0x1cf   :  { %v4360_v7 = vpop.xlane.xlu1 %1007 }
 0x1d0   :  { %v4362_v27 = vpop.xlane.xlu0 %1639 }
 0x1d1   :  { %4739 = vst [vmem:[#allocation6_spill] sm:$0xff] %v4362_v27 }
 0x1d3   :  { %v4364_v10 = vpop.xlane.xlu1 %1043 }
 0x1d4   :  { %v4366_v51 = vpop.xlane.xlu0 %1642 }
 0x1d5   :  { %4740 = vst [vmem:[#allocation9_spill] sm:$0xff] %v4366_v51 }
 0x1d7   :  { %v130_v37 = vpop.permute.xlu1 %129 }
 0x1d8   :  { %v4368_v36 = vpop.xlane.xlu0 %1621  ;;  %v132_v33 = vadd.f32 %v130_v37, %v4152_v42  ;;  %v133_v14 = vadd.f32 %v130_v37, %v79_v49  ;;  %v134_v46 = vadd.f32 %v130_v37, %v82_v45  ;;  %v135_v0 = vadd.f32 %v130_v37, %v4205_v39 }
 0x1d9   :  { %4741 = vst [vmem:[#allocation10_spill] sm:$0xff] %v4368_v36  ;;  %v136_v38 = vadd.f32 %v130_v37, %v88_v13  ;;  %v137_v35 = vadd.f32 %v130_v37, %v4238_v56  ;;  %v138_v16 = vadd.f32 %v130_v37, %v94_v4  ;;  %v139_v41 = vadd.f32 %v130_v37, %v4267_v18 }
 0x1da   :  { %v140_v29 = vadd.f32 %v130_v37, %v4172_v40  ;;  %v141_v26 = vadd.f32 %v130_v37, %v4188_v44  ;;  %v142_v28 = vadd.f32 %v130_v37, %v106_v59  ;;  %v143_v6 = vadd.f32 %v130_v37, %v4224_v58 }
 0x1db   :  { %v144_v21 = vadd.f32 %v130_v37, %v112_v8  ;;  %v145_v42 = vadd.f32 %v130_v37, %v4254_v43  ;;  %v146_v49 = vadd.f32 %v130_v37, %v118_v12  ;;  %v147_v45 = vadd.f32 %v130_v37, %v4282_v52 }
 0x1dc   :  { %v4379_v39 = vpop.xlane.xlu0 %1624  ;;  %v148_v13 = vmax.f32 %v132_v33, 0.0  ;;  %v149_v56 = vmax.f32 %v133_v14, 0.0  ;;  %v150_v4 = vmax.f32 %v134_v46, 0.0  ;;  %v151_v17 = vmax.f32 %v135_v0, 0.0 }
 0x1dd   :  { %4742 = vst [vmem:[#allocation11_spill] sm:$0xff] %v4379_v39  ;;  %v152_v18 = vmax.f32 %v136_v38, 0.0  ;;  %v153_v51 = vmax.f32 %v137_v35, 0.0  ;;  %v154_v40 = vmax.f32 %v138_v16, 0.0  ;;  %v155_v27 = vmax.f32 %v139_v41, 0.0 }
 0x1de   :  { %v156_v44 = vmax.f32 %v140_v29, 0.0  ;;  %v157_v59 = vmax.f32 %v141_v26, 0.0  ;;  %v158_v30 = vmax.f32 %v142_v28, 0.0  ;;  %v159_v58 = vmax.f32 %v143_v6, 0.0 }
 0x1df   :  { %v160_v8 = vmax.f32 %v144_v21, 0.0  ;;  %v161_v25 = vmax.f32 %v145_v42, 0.0  ;;  %v162_v43 = vmax.f32 %v146_v49, 0.0  ;;  %v163_v12 = vmax.f32 %v147_v45, 0.0 }
 0x1e0   :  { %v4381_v36 = vpop.f32.mrb[4].mxu0  ;;  %v4383_v52 = vpop.xlane.xlu0 %1645  ;;  %v164_v37 = vpack.c.bf16 %v149_v56, %v148_v13  ;;  %v165_v33 = vpack.c.bf16 %v151_v17, %v150_v4  ;;  %v166_v14 = vpack.c.bf16 %v153_v51, %v152_v18  ;;  %v167_v46 = vpack.c.bf16 %v155_v27, %v154_v40 }
 0x1e1   :  { %4743 = vst [vmem:[#allocation12_spill] sm:$0xff] %v4381_v36  ;;  %4744 = vst [vmem:[#allocation13_spill] sm:$0xff] %v4383_v52  ;;  %v2998_v0 = vpop.f32.mrb[5].mxu0  ;;  %v168_v38 = vpack.c.bf16 %v157_v59, %v156_v44  ;;  %v169_v35 = vpack.c.bf16 %v159_v58, %v158_v30  ;;  %v170_v16 = vpack.c.bf16 %v161_v25, %v160_v8 }
 0x1e2   :  { %v171_v41 = vpack.c.bf16 %v163_v12, %v162_v43  ;;  %v972_v29 = vpop.f32.mrb[6].mxu0  ;;  %v509_v26 = vunpack.c.l.b16 %v164_v37  ;;  %v510_v28 = vunpack.c.h.b16 %v164_v37  ;;  %v511_v6 = vunpack.c.l.b16 %v165_v33  ;;  %v1057_v37 = vpop.permute.xlu1 %1056 }
 0x1e3   :  { %v512_v21 = vunpack.c.h.b16 %v165_v33  ;;  %v2999_v42 = vpop.f32.mrb[7].mxu0  ;;  %v513_v49 = vunpack.c.l.b16 %v166_v14  ;;  %v514_v45 = vunpack.c.h.b16 %v166_v14  ;;  %v515_v36 = vunpack.c.l.b16 %v167_v46 }
 0x1e4   :  { %v516_v39 = vunpack.c.h.b16 %v167_v46  ;;  %v4385_v52 = vpop.xlane.xlu0 %1648  ;;  %v517_v17 = vunpack.c.l.b16 %v168_v38  ;;  %v518_v51 = vunpack.c.h.b16 %v168_v38  ;;  %v519_v27 = vunpack.c.l.b16 %v169_v35 }
 0x1e5   :  { %v520_v13 = vunpack.c.h.b16 %v169_v35  ;;  %v521_v56 = vunpack.c.l.b16 %v170_v16  ;;  %v522_v30 = vunpack.c.h.b16 %v170_v16  ;;  %v523_v25 = vunpack.c.l.b16 %v171_v41 }
 0x1e6   :  { %v524_v4 = vunpack.c.h.b16 %v171_v41  ;;  %v528_v18 = vrot.slane %v509_v26, %v3597_v34  ;;  %v532_v40 = vrot.slane %v510_v28, %v3599_v50  ;;  %v537_v44 = vrot.slane %v511_v6, %v3601_v48 }
 0x1e7   :  { %v542_v59 = vrot.slane %v512_v21, %v3603_v53  ;;  %v547_v58 = vrot.slane %v513_v49, %v3605_v54  ;;  %v552_v8 = vrot.slane %v514_v45, %v3612_v60  ;;  %v557_v43 = vrot.slane %v515_v36, %v3614_v61 }
 0x1e8   :  { %v562_v12 = vrot.slane %v516_v39, %v3616_v1  ;;  %v533_v33 = vsel %vm347_vm2, %v532_v40, %v528_v18  ;;  %v567_v14 = vrot.slane %v517_v17, %v3597_v34  ;;  %v571_v46 = vrot.slane %v518_v51, %v3599_v50  ;;  %v4399_v38 = vpop.xlane.xlu0 %1627 }
 0x1e9   :  { %v576_v0 = vrot.slane %v519_v27, %v3601_v48  ;;  %v538_v35 = vsel %vm354_vm3, %v537_v44, %v533_v33  ;;  %v581_v16 = vrot.slane %v520_v13, %v3603_v53  ;;  %v586_v41 = vrot.slane %v521_v56, %v3605_v54 }
 0x1ea   :  { %v591_v36 = vrot.slane %v522_v30, %v3612_v60  ;;  %v543_v39 = vsel %vm361_vm4, %v542_v59, %v538_v35  ;;  %v572_v29 = vsel %vm347_vm2, %v571_v46, %v567_v14  ;;  %v596_v26 = vrot.slane %v523_v25, %v3614_v61 }
 0x1eb   :  { %v601_v28 = vrot.slane %v524_v4, %v3616_v1  ;;  %v548_v6 = vsel %vm368_vm5, %v547_v58, %v543_v39  ;;  %v577_v21 = vsel %vm354_vm3, %v576_v0, %v572_v29  ;;  %v1059_v42 = vadd.f32 %v1057_v37, %v4289_v57 }
 0x1ec   :  { %v1060_v49 = vadd.f32 %v1057_v37, %v4295_v20  ;;  %v553_v45 = vsel %vm375_vm6, %v552_v8, %v548_v6  ;;  %v582_v17 = vsel %vm361_vm4, %v581_v16, %v577_v21  ;;  %v4415_v51 = vpop.xlane.xlu0 %1630  ;;  %v1061_v27 = vadd.f32 %v1057_v37, %v4360_v7 }
 0x1ed   :  { %v1062_v13 = vadd.f32 %v1057_v37, %v4313_v32  ;;  %v558_v56 = vsel %vm382_vm7, %v557_v43, %v553_v45  ;;  %v587_v30 = vsel %vm368_vm5, %v586_v41, %v582_v17  ;;  %v1063_v25 = vadd.f32 %v1057_v37, %v4322_v63 }
 0x1ee   :  { %v1064_v57 = vadd.f32 %v1057_v37, %v4324_v24  ;;  %v563_v20 = vsel %vm389_vm8, %v562_v12, %v558_v56  ;;  %v592_v4 = vsel %vm375_vm6, %v591_v36, %v587_v30  ;;  %v1065_v18 = vadd.f32 %v1057_v37, %v4335_v11  ;;  %v3135_v30 = vld [vmem:[%s4710_s4 + $0x70] sm:$0xff]  }
 0x1ef   :  { %v1066_v40 = vadd.f32 %v1057_v37, %v4341_v3  ;;  %v597_v7 = vsel %vm382_vm7, %v596_v26, %v592_v4  ;;  %v1067_v32 = vadd.f32 %v1057_v37, %v4300_v31  ;;  %v1068_v44 = vadd.f32 %v1057_v37, %v4305_v23  ;;  %v3133_v31 = vld [vmem:[%s4710_s4 + $0x60] sm:$0xff]  }
 0x1f0   :  { %v1069_v59 = vadd.f32 %v1057_v37, %v4318_v55  ;;  %v602_v63 = vsel %vm389_vm8, %v601_v28, %v597_v7  ;;  %v4432_v58 = vpop.xlane.xlu0 %1654  ;;  %v1070_v24 = vadd.f32 %v1057_v37, %v4320_v22  ;;  %v1071_v8 = vadd.f32 %v1057_v37, %v4328_v62 }
 0x1f1   :  { %v1072_v11 = vadd.f32 %v1057_v37, %v4330_v2  ;;  %v603_v3 = vsel %vm430_vm9, %v602_v63, %v563_v20  ;;  %v1073_v23 = vadd.f32 %v1057_v37, %v4364_v10  ;;  %v1074_v55 = vadd.f32 %v1057_v37, %v4347_v19  ;;  %v3134_v19 = vld [vmem:[%s4710_s4 + $0x68] sm:$0xff]  }
 0x1f2   :  { %v1075_v43 = vmax.f32 %v1059_v42, 0.0  ;;  %v604_v12 = vpack.c.b16 %v603_v3, %v603_v3  ;;  %v1076_v33 = vmax.f32 %v1060_v49, 0.0  ;;  %v1077_v14 = vmax.f32 %v1061_v27, 0.0  ;;  %v3136_v3 = vld [vmem:[%s4710_s4 + $0x78] sm:$0xff]  }
 0x1f3   :  { %v1078_v46 = vmax.f32 %v1062_v13, 0.0  ;;  %v1079_v22 = vmax.f32 %v1063_v25, 0.0  ;;  %v1080_v0 = vmax.f32 %v1064_v57, 0.0  ;;  %v1081_v62 = vmax.f32 %v1065_v18, 0.0 }
 0x1f4   :  { %v1082_v35 = vmax.f32 %v1066_v40, 0.0  ;;  %2985 = vmatmul.mubr.msk.bf16.vlgmr.msra.gmra.mrb[0].mxu1 %vm457_vm10, %v604_v12  ;;  %v4444_v2 = vpop.xlane.xlu0 %2217  ;;  %v1083_v16 = vmax.f32 %v1067_v32, 0.0  ;;  %v1084_v41 = vmax.f32 %v1068_v44, 0.0  ;;  %v1085_v36 = vmax.f32 %v1069_v59, 0.0 }
 0x1f5   :  { %v1086_v39 = vmax.f32 %v1070_v24, 0.0  ;;  %3001 = vmatpush3.bf16.msra.mxu1 %v3133_v31  ;;  %3008 = vmatprep.mubr.msk.bf16.mxu1 %vm3191_vm1, %v4729_v9  ;;  %v1087_v10 = vmax.f32 %v1071_v8, 0.0  ;;  %v1088_v37 = vmax.f32 %v1072_v11, 0.0  ;;  %v1089_v29 = vmax.f32 %v1073_v23, 0.0 }
 0x1f6   :  { %3002 = vmatprep.subr.bf16.mxu1 %v4729_v9  ;;  %v1090_v26 = vmax.f32 %v1074_v55, 0.0  ;;  %v1091_v28 = vpack.c.bf16 %v1076_v33, %v1075_v43  ;;  %v1092_v6 = vpack.c.bf16 %v1078_v46, %v1077_v14  ;;  %v1093_v21 = vpack.c.bf16 %v1080_v0, %v1079_v22 }
 0x1f7   :  { %v1094_v42 = vpack.c.bf16 %v1082_v35, %v1081_v62  ;;  %v1095_v49 = vpack.c.bf16 %v1084_v41, %v1083_v16  ;;  %v1096_v45 = vpack.c.bf16 %v1086_v39, %v1085_v36  ;;  %v1097_v25 = vpack.c.bf16 %v1088_v37, %v1087_v10 }
 0x1f8   :  { %v1116_v17 = vunpack.c.l.b16 %v1091_v28  ;;  %v1117_v27 = vunpack.c.h.b16 %v1091_v28  ;;  %v1118_v13 = vunpack.c.l.b16 %v1092_v6  ;;  %v4452_v56 = vpop.xlane.xlu0 %2220  ;;  %v1119_v57 = vunpack.c.h.b16 %v1092_v6 }
 0x1f9   :  { %3003 = vmatpush3.bf16.msra.mxu1 %v3134_v19  ;;  %v1124_v20 = vunpack.c.l.b16 %v1095_v49  ;;  %v1125_v4 = vunpack.c.h.b16 %v1095_v49  ;;  %v1126_v18 = vunpack.c.l.b16 %v1096_v45  ;;  %v1098_v40 = vpack.c.bf16 %v1090_v26, %v1089_v29 }
 0x1fa   :  { %3004 = vmatprep.subr.bf16.mxu1 %v4729_v9  ;;  %v1120_v7 = vunpack.c.l.b16 %v1093_v21  ;;  %v1121_v32 = vunpack.c.h.b16 %v1093_v21  ;;  %v1122_v44 = vunpack.c.l.b16 %v1094_v42  ;;  %v1127_v59 = vunpack.c.h.b16 %v1096_v45 }
 0x1fb   :  { %v1135_v63 = vrot.slane %v1116_v17, %v3597_v34  ;;  %v1139_v24 = vrot.slane %v1117_v27, %v3599_v50  ;;  %v1144_v8 = vrot.slane %v1118_v13, %v3601_v48  ;;  %v1123_v31 = vunpack.c.h.b16 %v1094_v42 }
 0x1fc   :  { %v4461_v11 = vpop.xlane.xlu0 %2241  ;;  %v1128_v23 = vunpack.c.l.b16 %v1097_v25  ;;  %v1129_v55 = vunpack.c.h.b16 %v1097_v25  ;;  %v1149_v43 = vrot.slane %v1119_v57, %v3603_v53  ;;  %v1174_v33 = vrot.slane %v1124_v20, %v3597_v34 }
 0x1fd   :  { %3005 = vmatpush3.bf16.msra.mxu1 %v3135_v30  ;;  %v1140_v12 = vsel %vm347_vm2, %v1139_v24, %v1135_v63  ;;  %v1178_v14 = vrot.slane %v1125_v4, %v3599_v50  ;;  %v1183_v46 = vrot.slane %v1126_v18, %v3601_v48  ;;  %v1130_v22 = vunpack.c.l.b16 %v1098_v40  ;;  %v3137_v18 = vld [vmem:[%s4710_s4 + $0xa0] sm:$0xff]   ;;  %v3139_v63 = vld [vmem:[%s4710_s4 + $0xb0] sm:$0xff]  }
 0x1fe   :  { %3006 = vmatprep.subr.bf16.mxu1 %v4729_v9  ;;  %v1131_v0 = vunpack.c.h.b16 %v1098_v40  ;;  %v1145_v62 = vsel %vm354_vm3, %v1144_v8, %v1140_v12  ;;  %v1154_v35 = vrot.slane %v1120_v7, %v3605_v54  ;;  %v1159_v41 = vrot.slane %v1121_v32, %v3612_v60  ;;  %v3138_v32 = vld [vmem:[%s4710_s4 + $0xa8] sm:$0xff]  }
 0x1ff   :  { %v1150_v16 = vsel %vm361_vm4, %v1149_v43, %v1145_v62  ;;  %v1179_v36 = vsel %vm347_vm2, %v1178_v14, %v1174_v33  ;;  %v1188_v39 = vrot.slane %v1127_v59, %v3603_v53  ;;  %v1164_v37 = vrot.slane %v1122_v44, %v3614_v61  ;;  %v4745_v14 = vld [vmem:[#allocation10_spill] sm:$0xff] }
 0x200   :  { %v4478_v19 = vpop.xlane.xlu0 %2244  ;;  %v1155_v10 = vsel %vm368_vm5, %v1154_v35, %v1150_v16  ;;  %v1184_v29 = vsel %vm354_vm3, %v1183_v46, %v1179_v36  ;;  %v1193_v26 = vrot.slane %v1128_v23, %v3605_v54  ;;  %v1169_v6 = vrot.slane %v1123_v31, %v3616_v1  ;;  %v4747_v16 = vld [vmem:[#allocation8_spill] sm:$0xff]  ;;  %v4748_v36 = vld [vmem:[#allocation7_spill] sm:$0xff] }
 0x201   :  { %3007 = vmatpush3.bf16.msra.mxu1 %v3136_v3  ;;  %v1160_v28 = vsel %vm375_vm6, %v1159_v41, %v1155_v10  ;;  %v1189_v21 = vsel %vm361_vm4, %v1188_v39, %v1184_v29  ;;  %v1198_v42 = vrot.slane %v1129_v55, %v3612_v60  ;;  %v1203_v17 = vrot.slane %v1130_v22, %v3614_v61  ;;  %v3140_v3 = vld [vmem:[%s4710_s4 + $0xb8] sm:$0xff]   ;;  %v4749_v10 = vld [vmem:[#allocation6_spill] sm:$0xff] }
 0x202   :  { %3024 = vmatprep.subr.bf16.mxu1 %v4729_v9  ;;  %v1165_v49 = vsel %vm382_vm7, %v1164_v37, %v1160_v28  ;;  %v1194_v45 = vsel %vm368_vm5, %v1193_v26, %v1189_v21  ;;  %v1208_v30 = vrot.slane %v1131_v0, %v3616_v1  ;;  %v4746_v22 = vld [vmem:[#allocation11_spill] sm:$0xff]  ;;  %v4750_v37 = vld [vmem:[#allocation9_spill] sm:$0xff] }
 0x203   :  { %v1170_v27 = vsel %vm389_vm8, %v1169_v6, %v1165_v49  ;;  %v1199_v13 = vsel %vm375_vm6, %v1198_v42, %v1194_v45 }
 0x204   :  { %v4495_v25 = vpop.xlane.xlu0 %2223  ;;  %v1204_v57 = vsel %vm382_vm7, %v1203_v17, %v1199_v13 }
 0x205   :  { %v1209_v20 = vsel %vm389_vm8, %v1208_v30, %v1204_v57 }
 0x206   :  { %v1210_v4 = vsel %vm430_vm9, %v1209_v20, %v1170_v27 }
 0x207   :  { %v1211_v40 = vpack.c.b16 %v1210_v4, %v1210_v4 }
 0x208   :  { %v4503_v7 = vpop.xlane.xlu0 %2247 }
 0x209   :  { %3009 = vmatmul.mubr.msk.bf16.vlgmr.msra.gmra.mrb[4].mxu1 %vm457_vm10, %v1211_v40 }
 0x20a   :  { %3025 = vmatpush3.bf16.msra.mxu1 %v3137_v18  ;;  %3032 = vmatprep.mubr.msk.bf16.mxu1 %vm3191_vm1, %v4729_v9 }
 0x20b   :  { %3026 = vmatprep.subr.bf16.mxu1 %v4729_v9 }
 0x20c   :  { %v1616_v44 = vpop.xlane.xlu1 %1615  ;;  %v4511_v59 = vpop.xlane.xlu0 %2250 }
 0x20e   :  { %3027 = vmatpush3.bf16.msra.mxu1 %v3138_v32 }
 0x20f   :  { %3028 = vmatprep.subr.bf16.mxu1 %v4729_v9 }
 0x210   :  { %v1652_v24 = vpop.xlane.xlu1 %1651  ;;  %v4517_v8 = vpop.xlane.xlu0 %2229 }
 0x212   :  { %3029 = vmatpush3.bf16.msra.mxu1 %v3139_v63 }
 0x213   :  { %3030 = vmatprep.subr.bf16.mxu1 %v4729_v9 }
 0x214   :  { %v1665_v31 = vpop.permute.xlu1 %1664  ;;  %v4523_v23 = vpop.xlane.xlu0 %2232 }
 0x215   :  { %v1667_v55 = vadd.f32 %v1665_v31, %v4350_v5  ;;  %v1668_v43 = vadd.f32 %v1665_v31, %v4352_v15  ;;  %v1669_v12 = vadd.f32 %v1665_v31, %v1616_v44  ;;  %v1670_v33 = vadd.f32 %v1665_v31, %v4358_v47  ;;  %v4751_v47 = vld [vmem:[#allocation13_spill] sm:$0xff] }
 0x216   :  { %v1671_v46 = vadd.f32 %v1665_v31, %v4745_v14  ;;  %v1672_v0 = vadd.f32 %v1665_v31, %v4746_v22  ;;  %v1673_v62 = vadd.f32 %v1665_v31, %v4399_v38  ;;  %v1674_v35 = vadd.f32 %v1665_v31, %v4415_v51  ;;  %3031 = vmatpush3.bf16.msra.mxu1 %v3140_v3 }
 0x217   :  { %v1675_v41 = vadd.f32 %v1665_v31, %v4747_v16  ;;  %v1676_v39 = vadd.f32 %v1665_v31, %v4748_v36  ;;  %v1677_v5 = vadd.f32 %v1665_v31, %v4749_v10  ;;  %v1678_v15 = vadd.f32 %v1665_v31, %v4750_v37  ;;  %3048 = vmatprep.subr.bf16.mxu1 %v4729_v9 }
 0x218   :  { %v4537_v29 = vpop.xlane.xlu0 %2253  ;;  %v1679_v26 = vadd.f32 %v1665_v31, %v4751_v47  ;;  %v1680_v28 = vadd.f32 %v1665_v31, %v4385_v52  ;;  %v1681_v6 = vadd.f32 %v1665_v31, %v1652_v24  ;;  %v1682_v38 = vadd.f32 %v1665_v31, %v4432_v58 }
 0x219   :  { %v1683_v51 = vmax.f32 %v1667_v55, 0.0  ;;  %v1684_v21 = vmax.f32 %v1668_v43, 0.0  ;;  %v1685_v42 = vmax.f32 %v1669_v12, 0.0  ;;  %v1686_v49 = vmax.f32 %v1670_v33, 0.0 }
 0x21a   :  { %v1687_v45 = vmax.f32 %v1671_v46, 0.0  ;;  %v1688_v17 = vmax.f32 %v1672_v0, 0.0  ;;  %v1689_v27 = vmax.f32 %v1673_v62, 0.0  ;;  %v1690_v13 = vmax.f32 %v1674_v35, 0.0 }
 0x21b   :  { %v1691_v30 = vmax.f32 %v1675_v41, 0.0  ;;  %v1692_v57 = vmax.f32 %v1676_v39, 0.0  ;;  %v1693_v20 = vmax.f32 %v1677_v5, 0.0  ;;  %v1694_v4 = vmax.f32 %v1678_v15, 0.0 }
 0x21c   :  { %v4543_v18 = vpop.xlane.xlu0 %2256  ;;  %v1695_v52 = vmax.f32 %v1679_v26, 0.0  ;;  %v1696_v40 = vmax.f32 %v1680_v28, 0.0  ;;  %v1697_v32 = vmax.f32 %v1681_v6, 0.0  ;;  %v1698_v58 = vmax.f32 %v1682_v38, 0.0 }
 0x21d   :  { %v1699_v44 = vpack.c.bf16 %v1684_v21, %v1683_v51  ;;  %v1700_v63 = vpack.c.bf16 %v1686_v49, %v1685_v42  ;;  %v1701_v24 = vpack.c.bf16 %v1688_v17, %v1687_v45  ;;  %v1702_v3 = vpack.c.bf16 %v1690_v13, %v1689_v27 }
 0x21e   :  { %v1703_v31 = vpack.c.bf16 %v1692_v57, %v1691_v30  ;;  %v1704_v55 = vpack.c.bf16 %v1694_v4, %v1693_v20  ;;  %v1705_v46 = vpack.c.bf16 %v1696_v40, %v1695_v52  ;;  %v1706_v16 = vpack.c.bf16 %v1698_v58, %v1697_v32 }
 0x21f   :  { %v1724_v43 = vunpack.c.l.b16 %v1699_v44  ;;  %v1725_v12 = vunpack.c.h.b16 %v1699_v44  ;;  %v1726_v33 = vunpack.c.l.b16 %v1700_v63  ;;  %v1727_v22 = vunpack.c.h.b16 %v1700_v63 }
 0x220   :  { %v4545_v14 = vpop.xlane.xlu0 %2235  ;;  %v1732_v0 = vunpack.c.l.b16 %v1703_v31  ;;  %v1733_v62 = vunpack.c.h.b16 %v1703_v31  ;;  %v1734_v35 = vunpack.c.l.b16 %v1704_v55  ;;  %v1728_v41 = vunpack.c.l.b16 %v1701_v24 }
 0x221   :  { %v1729_v36 = vunpack.c.h.b16 %v1701_v24  ;;  %v1730_v39 = vunpack.c.l.b16 %v1702_v3  ;;  %v1735_v10 = vunpack.c.h.b16 %v1704_v55  ;;  %v1743_v5 = vrot.slane %v1724_v43, %v3597_v34 }
 0x222   :  { %v1747_v37 = vrot.slane %v1725_v12, %v3599_v50  ;;  %v1752_v15 = vrot.slane %v1726_v33, %v3601_v48  ;;  %v1731_v26 = vunpack.c.h.b16 %v1702_v3  ;;  %v1736_v28 = vunpack.c.l.b16 %v1705_v46 }
 0x223   :  { %v1737_v6 = vunpack.c.h.b16 %v1705_v46  ;;  %v1757_v38 = vrot.slane %v1727_v22, %v3603_v53  ;;  %v1782_v21 = vrot.slane %v1732_v0, %v3597_v34  ;;  %v1786_v42 = vrot.slane %v1733_v62, %v3599_v50  ;;  %v4557_v45 = vpop.f32.mrb[8].mxu0 }
 0x224   :  { %v4550_v47 = vpop.xlane.xlu0 %2238  ;;  %v1748_v51 = vsel %vm347_vm2, %v1747_v37, %v1743_v5  ;;  %v1791_v49 = vrot.slane %v1734_v35, %v3601_v48  ;;  %v1738_v17 = vunpack.c.l.b16 %v1706_v16  ;;  %v1739_v27 = vunpack.c.h.b16 %v1706_v16  ;;  %v3022_v57 = vpop.f32.mrb[9].mxu0 }
 0x225   :  { %v1753_v13 = vsel %vm354_vm3, %v1752_v15, %v1748_v51  ;;  %v1762_v30 = vrot.slane %v1728_v41, %v3605_v54  ;;  %v1767_v4 = vrot.slane %v1729_v36, %v3612_v60  ;;  %v1787_v52 = vsel %vm347_vm2, %v1786_v42, %v1782_v21  ;;  %v1580_v32 = vpop.f32.mrb[10].mxu0  ;;  %v3142_v15 = vld [vmem:[%s4710_s4 + $0xe8] sm:$0xff]   ;;  %v3143_v51 = vld [vmem:[%s4710_s4 + $0xf0] sm:$0xff]  }
 0x226   :  { %v1758_v20 = vsel %vm361_vm4, %v1757_v38, %v1753_v13  ;;  %v1796_v40 = vrot.slane %v1735_v10, %v3603_v53  ;;  %v1772_v44 = vrot.slane %v1730_v39, %v3614_v61  ;;  %v1792_v63 = vsel %vm354_vm3, %v1791_v49, %v1787_v52  ;;  %v3023_v3 = vpop.f32.mrb[11].mxu0  ;;  %v3141_v10 = vld [vmem:[%s4710_s4 + $0xe0] sm:$0xff]   ;;  %v3144_v49 = vld [vmem:[%s4710_s4 + $0xf8] sm:$0xff]  }
 0x227   :  { %v1763_v58 = vsel %vm368_vm5, %v1762_v30, %v1758_v20  ;;  %v1801_v24 = vrot.slane %v1736_v28, %v3605_v54  ;;  %v1777_v55 = vrot.slane %v1731_v26, %v3616_v1  ;;  %v1806_v12 = vrot.slane %v1737_v6, %v3612_v60 }
 0x228   :  { %v1768_v31 = vsel %vm375_vm6, %v1767_v4, %v1763_v58  ;;  %v1797_v43 = vsel %vm361_vm4, %v1796_v40, %v1792_v63  ;;  %v1811_v22 = vrot.slane %v1738_v17, %v3614_v61  ;;  %v4576_v0 = vpop.xlane.xlu0 %2259  ;;  %v1816_v16 = vrot.slane %v1739_v27, %v3616_v1 }
 0x229   :  { %v1773_v33 = vsel %vm382_vm7, %v1772_v44, %v1768_v31  ;;  %v1802_v46 = vsel %vm368_vm5, %v1801_v24, %v1797_v43 }
 0x22a   :  { %v1778_v62 = vsel %vm389_vm8, %v1777_v55, %v1773_v33  ;;  %v1807_v35 = vsel %vm375_vm6, %v1806_v12, %v1802_v46 }
 0x22b   :  { %v1812_v41 = vsel %vm382_vm7, %v1811_v22, %v1807_v35 }
 0x22c   :  { %v1817_v36 = vsel %vm389_vm8, %v1816_v16, %v1812_v41 }
 0x22d   :  { %v1818_v39 = vsel %vm430_vm9, %v1817_v36, %v1778_v62 }
 0x22e   :  { %v1819_v5 = vpack.c.b16 %v1818_v39, %v1818_v39 }
 0x230   :  { %v4587_v37 = vpop.permute.xlu0 %2272  ;;  %3033 = vmatmul.mubr.msk.bf16.vlgmr.msra.gmra.mrb[8].mxu1 %vm457_vm10, %v1819_v5 }
 0x231   :  { %3049 = vmatpush3.bf16.msra.mxu1 %v3141_v10  ;;  %v2283_v26 = vadd.f32 %v4587_v37, %v4461_v11  ;;  %v2284_v28 = vadd.f32 %v4587_v37, %v4478_v19  ;;  %3056 = vmatprep.mubr.msk.bf16.mxu1 %vm3191_vm1, %v4729_v9  ;;  %v2285_v6 = vadd.f32 %v4587_v37, %v4503_v7 }
 0x232   :  { %3050 = vmatprep.subr.bf16.mxu1 %v4729_v9  ;;  %v2286_v38 = vadd.f32 %v4587_v37, %v4511_v59  ;;  %v2275_v7 = vadd.f32 %v4587_v37, %v4444_v2  ;;  %v2276_v59 = vadd.f32 %v4587_v37, %v4452_v56  ;;  %v2279_v27 = vadd.f32 %v4587_v37, %v4517_v8 }
 0x233   :  { %v2299_v11 = vmax.f32 %v2283_v26, 0.0  ;;  %v2300_v21 = vmax.f32 %v2284_v28, 0.0  ;;  %v2301_v19 = vmax.f32 %v2285_v6, 0.0  ;;  %v2280_v13 = vadd.f32 %v4587_v37, %v4523_v23 }
 0x234   :  { %v2302_v42 = vmax.f32 %v2286_v38, 0.0  ;;  %v2287_v30 = vadd.f32 %v4587_v37, %v4537_v29  ;;  %v2288_v57 = vadd.f32 %v4587_v37, %v4543_v18  ;;  %v2291_v2 = vmax.f32 %v2275_v7, 0.0 }
 0x235   :  { %3051 = vmatpush3.bf16.msra.mxu1 %v3142_v15  ;;  %v2311_v17 = vpack.c.bf16 %v2300_v21, %v2299_v11  ;;  %v2292_v4 = vmax.f32 %v2276_v59, 0.0  ;;  %v2295_v40 = vmax.f32 %v2279_v27, 0.0  ;;  %v2296_v32 = vmax.f32 %v2280_v13, 0.0 }
 0x236   :  { %3052 = vmatprep.subr.bf16.mxu1 %v4729_v9  ;;  %v2312_v20 = vpack.c.bf16 %v2302_v42, %v2301_v19  ;;  %v2303_v8 = vmax.f32 %v2287_v30, 0.0  ;;  %v2304_v58 = vmax.f32 %v2288_v57, 0.0  ;;  %v2281_v23 = vadd.f32 %v4587_v37, %v4545_v14 }
 0x237   :  { %v2340_v56 = vunpack.c.l.b16 %v2311_v17  ;;  %v2341_v52 = vunpack.c.h.b16 %v2311_v17  ;;  %v2282_v29 = vadd.f32 %v4587_v37, %v4550_v47  ;;  %v2307_v18 = vpack.c.bf16 %v2292_v4, %v2291_v2 }
 0x238   :  { %v2342_v44 = vunpack.c.l.b16 %v2312_v20  ;;  %v2277_v3 = vadd.f32 %v4587_v37, %v4495_v25  ;;  %v2309_v55 = vpack.c.bf16 %v2296_v32, %v2295_v40  ;;  %v2313_v43 = vpack.c.bf16 %v2304_v58, %v2303_v8 }
 0x239   :  { %3053 = vmatpush3.bf16.msra.mxu1 %v3143_v51  ;;  %v2390_v63 = vrot.slane %v2340_v56, %v3597_v34  ;;  %v2394_v24 = vrot.slane %v2341_v52, %v3599_v50  ;;  %v2297_v46 = vmax.f32 %v2281_v23, 0.0  ;;  %v2298_v14 = vmax.f32 %v2282_v29, 0.0 }
 0x23a   :  { %3054 = vmatprep.subr.bf16.mxu1 %v4729_v9  ;;  %v2399_v33 = vrot.slane %v2342_v44, %v3601_v48  ;;  %v2332_v22 = vunpack.c.l.b16 %v2307_v18  ;;  %v2333_v62 = vunpack.c.h.b16 %v2307_v18  ;;  %v2343_v47 = vunpack.c.h.b16 %v2312_v20 }
 0x23b   :  { %v2395_v35 = vsel %vm347_vm2, %v2394_v24, %v2390_v63  ;;  %v2293_v16 = vmax.f32 %v2277_v3, 0.0  ;;  %v2289_v25 = vadd.f32 %v4587_v37, %v4576_v0  ;;  %v2344_v10 = vunpack.c.l.b16 %v2313_v43 }
 0x23c   :  { %v2400_v28 = vsel %vm354_vm3, %v2399_v33, %v2395_v35  ;;  %v2310_v38 = vpack.c.bf16 %v2298_v14, %v2297_v46  ;;  %v2336_v51 = vunpack.c.l.b16 %v2309_v55  ;;  %v2351_v11 = vrot.slane %v2332_v22, %v3597_v34 }
 0x23d   :  { %3055 = vmatpush3.bf16.msra.mxu1 %v3144_v49  ;;  %v2355_v21 = vrot.slane %v2333_v62, %v3599_v50  ;;  %v2404_v19 = vrot.slane %v2343_v47, %v3603_v53  ;;  %v2305_v7 = vmax.f32 %v2289_v25, 0.0  ;;  %v2337_v17 = vunpack.c.h.b16 %v2309_v55  ;;  %v4752_v47 = vld [vmem:[#allocation5_spill] sm:$0xff] }
 0x23e   :  { %3072 = vmatprep.subr.bf16.mxu1 %v4729_v9  ;;  %v2345_v27 = vunpack.c.h.b16 %v2313_v43  ;;  %v2409_v13 = vrot.slane %v2344_v10, %v3605_v54  ;;  %v2338_v20 = vunpack.c.l.b16 %v2310_v38  ;;  %v2370_v2 = vrot.slane %v2336_v51, %v3605_v54 }
 0x23f   :  { %v2356_v50 = vsel %vm347_vm2, %v2355_v21, %v2351_v11  ;;  %v2339_v4 = vunpack.c.h.b16 %v2310_v38  ;;  %v2375_v58 = vrot.slane %v2337_v17, %v3612_v60 }
 0x240   :  { %v2380_v54 = vrot.slane %v2338_v20, %v3614_v61  ;;  %v2895_v20 = vld [vmem:[%s4711_s5] ss:$0 sm:$0xff] }
 0x241   :  { %v2385_v63 = vrot.slane %v2339_v4, %v3616_v1 }
 0x245   :  { %v2227_v31 = vpop.xlane.xlu1 %2226 }
 0x246   :  { %v2278_v12 = vadd.f32 %v4587_v37, %v2227_v31 }
 0x248   :  { %v2294_v41 = vmax.f32 %v2278_v12, 0.0  ;;  %v4636_v36 = vpop.f32.mrb[12].mxu0 }
 0x249   :  { %v2263_v39 = vpop.xlane.xlu1 %2262  ;;  %v3046_v5 = vpop.f32.mrb[13].mxu0 }
 0x24a   :  { %v2308_v15 = vpack.c.bf16 %v2294_v41, %v2293_v16  ;;  %v2290_v26 = vadd.f32 %v4587_v37, %v2263_v39  ;;  %v2188_v6 = vpop.f32.mrb[14].mxu0  ;;  %v2405_v37 = vsel %vm361_vm4, %v2404_v19, %v2400_v28  ;;  %v4753_v39 = vld [vmem:[#allocation12_spill] sm:$0xff] }
 0x24b   :  { %v3047_v42 = vpop.f32.mrb[15].mxu0  ;;  %v2410_v32 = vsel %vm368_vm5, %v2409_v13, %v2405_v37 }
 0x24c   :  { %v2334_v49 = vunpack.c.l.b16 %v2308_v15  ;;  %v2335_v0 = vunpack.c.h.b16 %v2308_v15  ;;  %v2306_v59 = vmax.f32 %v2290_v26, 0.0 }
 0x24e   :  { %v2360_v30 = vrot.slane %v2334_v49, %v3601_v48  ;;  %v2365_v57 = vrot.slane %v2335_v0, %v3603_v53  ;;  %v2314_v34 = vpack.c.bf16 %v2306_v59, %v2305_v7  ;;  %v2414_v48 = vrot.slane %v2345_v27, %v3612_v60  ;;  %v2909_v27 = vld [vmem:[%s4714_s8] ss:$0 sm:$0xff]  ;;  %s3164_s8 = scalar_lea.vmem %s2762_s26, 32 }
 0x24f   :  { %p3165_p0 = scmp.ne.s32.totalorder %s2762_s26, %s3164_s8  ;;  %p3170_p2 = scmp.lt.s32.totalorder %s3164_s8, %s3164_s8 }
 0x250   :  { %v2361_v56 = vsel %vm354_vm3, %v2360_v30, %v2356_v50  ;;  %v2346_v52 = vunpack.c.l.b16 %v2314_v34  ;;  %v2347_v40 = vunpack.c.h.b16 %v2314_v34  ;;  %v2415_v18 = vsel %vm375_vm6, %v2414_v48, %v2410_v32 }
 0x251   :  { %v2366_v8 = vsel %vm361_vm4, %v2365_v57, %v2361_v56  ;;  %p3171_p3 = por %p3170_p2, %p3169_p1 }
 0x252   :  { %v2371_v53 = vsel %vm368_vm5, %v2370_v2, %v2366_v8  ;;  %v2419_v44 = vrot.slane %v2346_v52, %v3614_v61  ;;  %v2424_v23 = vrot.slane %v2347_v40, %v3616_v1  ;;  %v3145_v61 = vld [vmem:[%s4713_s7] sm:$0xff]   ;;  %v3146_v1 = vld [vmem:[%s4713_s7 + $0x8] sm:$0xff]  }
 0x253   :  { %v2376_v29 = vsel %vm375_vm6, %v2375_v58, %v2371_v53  ;;  %p3172_p4 = pnand %p3171_p3, %p3165_p0 }
 0x254   :  { %v2420_v24 = vsel %vm382_vm7, %v2419_v44, %v2415_v18  ;;  %v2381_v3 = vsel %vm382_vm7, %v2380_v54, %v2376_v29 }
 0x255   :  { %v2425_v60 = vsel %vm389_vm8, %v2424_v23, %v2420_v24  ;;  %v2386_v31 = vsel %vm389_vm8, %v2385_v63, %v2381_v3 }
 0x256   :  { %v2426_v55 = vsel %vm430_vm9, %v2425_v60, %v2386_v31 }
 0x257   :  { %v2427_v43 = vpack.c.b16 %v2426_v55, %v2426_v55 }
 0x259   :  { %3057 = vmatmul.mubr.msk.bf16.vlgmr.msra.gmra.mrb[12].mxu1 %vm457_vm10, %v2427_v43 }
 0x25a   :  { %3073 = vmatpush3.bf16.msra.mxu1 %v3145_v61  ;;  %3076 = vmatprep.mubr.msk.bf16.mxu1 %vm3191_vm1, %v4729_v9 }
 0x25b   :  { %v2631_v12 = vpop.f32.mrb[16].mxu0  ;;  %3074 = vmatprep.subr.bf16.mxu1 %v4729_v9 }
 0x25c   :  { %v3070_v33 = vpop.f32.mrb[17].mxu0  ;;  %v2637_v22 = vpack.c.bf16 %v2631_v12, %v2631_v12 }
 0x25d   :  { %v2634_v46 = vpop.f32.mrb[18].mxu0 }
 0x25e   :  { %v3071_v14 = vpop.f32.mrb[19].mxu0  ;;  %3075 = vmatpush3.bf16.msra.mxu1 %v3146_v1 }
 0x25f   :  { %3080 = vmatprep.subr.bf16.mxu1 %v4729_v9 }
 0x261   :  { %3077 = vmatmul.mubr.msk.bf16.vlgmr.msra.gmra.mrb[16].mxu1 %vm2661_vm0, %v2637_v22 }
 0x262   :  { %3082 = vmatprep.mubr.msk.bf16.mxu1 %vm3191_vm1, %v4729_v9  ;;  %vm2753_vm1 = vcmask 9216  }
 0x2c7   :  { %v666_v62 = vpop.f32.mrb[0].mxu1 }
 0x2c8   :  { %v667_v35 = vadd.f32 %v666_v62, %v4752_v47  ;;  %v2986_v16 = vpop.f32.mrb[1].mxu1 }
 0x2c9   :  { %v669_v41 = vpop.f32.mrb[2].mxu1 }
 0x2ca   :  { %v2987_v25 = vpop.f32.mrb[3].mxu1  ;;  %v975_v10 = vadd.f32 %v4753_v39, %v667_v35 }
 0x2dc   :  { %v1273_v5 = vpop.f32.mrb[4].mxu1 }
 0x2dd   :  { %v1279_v15 = vadd.f32 %v1273_v5, %v975_v10  ;;  %v3010_v26 = vpop.f32.mrb[5].mxu1 }
 0x2de   :  { %v1276_v28 = vpop.f32.mrb[6].mxu1 }
 0x2df   :  { %v3011_v6 = vpop.f32.mrb[7].mxu1  ;;  %v1583_v38 = vadd.f32 %v4557_v45, %v1279_v15 }
 0x303   :  { %v1881_v51 = vpop.f32.mrb[8].mxu1 }
 0x304   :  { %v1887_v11 = vadd.f32 %v1881_v51, %v1583_v38  ;;  %v3034_v21 = vpop.f32.mrb[9].mxu1 }
 0x305   :  { %v1884_v19 = vpop.f32.mrb[10].mxu1 }
 0x306   :  { %v3035_v9 = vpop.f32.mrb[11].mxu1  ;;  %v2191_v42 = vadd.f32 %v4636_v36, %v1887_v11 }
 0x32c   :  { %v2489_v49 = vpop.f32.mrb[12].mxu1 }
 0x32d   :  { %v2495_v0 = vadd.f32 %v2489_v49, %v2191_v42  ;;  %v3058_v7 = vpop.f32.mrb[13].mxu1 }
 0x32e   :  { %v2492_v59 = vpop.f32.mrb[14].mxu1 }
 0x32f   :  { %v3059_v17 = vpop.f32.mrb[15].mxu1  ;;  %v2503_v50 = vadd.f32 %v2895_v20, %v2495_v0 }
 0x331   :  { %v2705_v2 = vpack.c.bf16 %v2503_v50, %v2503_v50 }
 0x334   :  { %v2699_v37 = vpop.f32.mrb[16].mxu1 }
 0x335   :  { %v2700_v13 = vadd.f32 %v2909_v27, %v2699_v37  ;;  %v3078_v30 = vpop.f32.mrb[17].mxu1 }
 0x336   :  { %v2702_v45 = vpop.f32.mrb[18].mxu1 }
 0x337   :  { %v2706_v57 = vpack.c.bf16 %v2700_v13, %v2700_v13  ;;  %v3079_v34 = vpop.f32.mrb[19].mxu1 }
 0x339   :  { %v2711_v36 = vsel %vm2661_vm0, %v2706_v57, 0 }
 0x33a   :  { %3081 = vmatpush3.bf16.xpose.msra.mxu1 %v2711_v36 }
 0x341   :  { %3083 = vmatmul.mubr.msk.bf16.vlgmr.msra.gmra.mrb[20].mxu1 %vm2661_vm0, %v2705_v2 }
 0x414   :  { %v2747_v4 = vpop.f32.mrb[20].mxu1 }
 0x415   :  { %2754 = vst.msk [vmem:[#allocation2] sm:$0x3] %vm2753_vm1, %v2747_v4  ;;  %v3084_v56 = vpop.f32.mrb[21].mxu1 }
 0x416   :  { %v2750_v52 = vpop.f32.mrb[22].mxu1 }
 0x417   :  { %3175 = shalt.err (!%p3172_p4)
}
 0x418   :  { %s3176_s28 = scalar_lea.hbm %s4715_s9, 32 }
 0x419   :  { %p3177_p5 = scmp.ne.s32.totalorder %s4715_s9, %s3176_s28  ;;  %p3180_p6 = scmp.lt.u32.totalorder %s3176_s28, %s4715_s9 }
 0x41b   :  { %p3182_p7 = pnand %p3180_p6, %p3177_p5 }
 0x41d   :  { %3185 = shalt.err (!%p3182_p7)
}
 0x41e   :  { %2764 = dma.vmem_to_hbm [thread:$0]  %s2762_s26, 32, %s4715_s9, [#allocation3]   ;;  %v3085_v40 = vpop.f32.mrb[23].mxu1 }
 0x41f   :  { %3186 = dma.done.wait [#allocation3], 32  }
 0x420   :  { %3187 = vsyncadd [#allocation3], 4294967264 }
 0x421   :  { %2768 = vsyncpa [#allocation3], 1 }

</bundles_post_ra>
